<compile_context>
chip_gen: v7x
topology: tpu7x:2x2x1
jax: 0.10.0
libtpu: 0.0.40
codegen_flags: <defaults>
</compile_context>

<pallas_src>
import functools

import jax
import jax.numpy as jnp
from jax.experimental import pallas as pl
from jax.experimental.pallas import tpu as pltpu

K = 1.0        # manifold curvature (CustomLorentz default k = 1)
SQRT_K = 1.0
EPS_BN = 1e-5  # LorentzBatchNorm.eps
EPS = 1e-8     # manifold clamp eps (centroid / Lorentz-norm clamps)

VMEM_LIMIT_BYTES = 32 * 1024 * 1024  # safe on v5e/v6e/v7x; tiles use far less


def _round_up(n, m):
    return ((n + m - 1) // m) * m


def _arccosh(z):
    z = jnp.maximum(z, 1.0 + 1e-7)
    return jnp.log(z + jnp.sqrt(z * z - 1.0))


# -------- column-layout helpers: arrays are (D, N), features on sublanes --------
def _l_inner_cols(a, b):
    """Lorentz inner product along the feature axis (axis 0) -> (1, N)."""
    return jnp.sum(a * b, axis=0, keepdims=True) - 2.0 * a[0:1, :] * b[0:1, :]


def _origin_col(d):
    row = jax.lax.broadcasted_iota(jnp.int32, (d, 1), 0)
    return jnp.where(row == 0, SQRT_K, 0.0).astype(jnp.float32)


def _valid_mask(tile_idx, tb, batch):
    lane = jax.lax.broadcasted_iota(jnp.int32, (1, tb), 1)
    return (tile_idx * tb + lane) < batch


def _log_transp0back(x, mean, o):
    """logmap(mean, x) then parallel transport mean -> origin.
    x: (D, TB), mean/o: (D, 1).  Returns tangent vectors at the origin."""
    inner_mx = _l_inner_cols(mean, x)                               # (1, TB)
    dist = SQRT_K * _arccosh(-inner_mx / K)                         # (1, TB)
    nomin = x + (1.0 / K) * inner_mx * mean                         # (D, TB)
    nomin_norm = jnp.sqrt(jnp.maximum(_l_inner_cols(nomin, nomin), EPS))
    # (1, TB) EUP reciprocal, then one (D, TB) multiply (no full-width divide)
    x_t = (dist * pl.reciprocal(nomin_norm, approx=True)) * nomin   # (D, TB)
    inv_den = 1.0 / (K + SQRT_K * mean[0:1, :])                     # (1, 1)
    coef = (-SQRT_K) * x_t[0:1, :] * inv_den                        # (1, TB)
    return x_t + coef * (mean + o)


# --------------------------------- Pallas kernels ---------------------------------
def _centroid_kernel(x_ref, mean_ref, acc_ref, *, batch, tb, need_mask):
    """Pass 1: accumulate sum(x) over the batch, finalize the Lorentz centroid."""
    i = pl.program_id(0)

    @pl.when(i == 0)
    def _():
        acc_ref[...] = jnp.zeros_like(acc_ref)

    x = x_ref[...].astype(jnp.float32)                              # (D, TB)
    if need_mask:
        x = jnp.where(_valid_mask(i, tb, batch), x, 0.0)
    acc_ref[...] += jnp.sum(x, axis=1, keepdims=True)               # (D, 1)

    @pl.when(i == pl.num_programs(0) - 1)
    def _():
        avg = acc_ref[...] * (1.0 / batch)                          # (D, 1)
        denom = jnp.sqrt(jnp.maximum(jnp.abs(-_l_inner_cols(avg, avg)), EPS))
        mean_ref[...] = (SQRT_K * avg / denom).astype(mean_ref.dtype)


def _variance_kernel(mean_ref, x_ref, var_ref, acc_ref, *, batch, tb, need_mask):
    """Pass 2: Frechet variance = mean_b ||transp0back(mean, logmap(mean, x_b))||."""
    i = pl.program_id(0)

    @pl.when(i == 0)
    def _():
        acc_ref[...] = jnp.zeros_like(acc_ref)

    x = x_ref[...].astype(jnp.float32)                              # (D, TB)
    mean = mean_ref[...]                                            # (D, 1)
    o = _origin_col(x.shape[0])
    x_t = _log_transp0back(x, mean, o)                              # (D, TB)
    norms = jnp.sqrt(jnp.sum(x_t * x_t, axis=0, keepdims=True))     # (1, TB)
    if need_mask:
        norms = jnp.where(_valid_mask(i, tb, batch), norms, 0.0)
    acc_ref[...] += jnp.sum(norms, axis=1, keepdims=True)           # (1, 1)

    @pl.when(i == pl.num_programs(0) - 1)
    def _():
        var_ref[...] = (acc_ref[...] * (1.0 / batch)).astype(var_ref.dtype)


def _apply_kernel(mean_ref, var_ref, beta_ref, gamma_ref, x_ref, out_ref):
    """Pass 3 (parallel over batch tiles): rescale in tangent space, transport to
    beta, expmap(beta, .)."""
    x = x_ref[...].astype(jnp.float32)                              # (D, TB)
    mean = mean_ref[...]                                            # (D, 1)
    beta = beta_ref[...]                                            # (D, 1)
    gamma = gamma_ref[...]                                          # (1, 1)
    var = var_ref[...]                                              # (1, 1)
    o = _origin_col(x.shape[0])

    x_t = _log_transp0back(x, mean, o)                              # (D, TB)

    # rescale in the tangent space at the origin (scalar coefficient)
    x_t = x_t * (gamma * (1.0 / (var + EPS_BN)))

    # transp0(beta, x_t): parallel transport origin -> beta
    inv_den_b = 1.0 / (K + SQRT_K * beta[0:1, :])                   # (1, 1)
    coef = _l_inner_cols(beta, x_t) * inv_den_b                     # (1, TB)
    x_t = x_t + coef * (beta + o)

    # expmap(beta, x_t): single exp + EUP reciprocal for cosh/sinh
    u_norm = jnp.sqrt(jnp.maximum(_l_inner_cols(x_t, x_t), EPS))    # (1, TB)
    theta = u_norm * (1.0 / SQRT_K)
    e = jnp.exp(theta)
    e_inv = pl.reciprocal(e, approx=True)
    cosh_t = 0.5 * (e + e_inv)
    sinh_t = 0.5 * (e - e_inv)
    coef_out = SQRT_K * sinh_t * pl.reciprocal(u_norm, approx=True)  # (1, TB)
    out = cosh_t * beta + coef_out * x_t                             # (D, TB)
    out_ref[...] = out.astype(out_ref.dtype)


# ------------------------ plain-JAX glue (running buffers) ------------------------
def _l_inner_last(a, b):
    return jnp.sum(a * b, axis=-1, keepdims=True) - 2.0 * a[..., 0:1] * b[..., 0:1]


def _expmap0(u):
    un = jnp.sqrt(jnp.maximum(_l_inner_last(u, u), EPS))
    theta = un / SQRT_K
    l_v = jnp.cosh(theta) * SQRT_K
    r_v = SQRT_K * jnp.sinh(theta) * u / un
    return jnp.concatenate([l_v + r_v[..., 0:1], r_v[..., 1:]], axis=-1)


def _logmap0(y):
    D = y.shape[-1]
    o = jnp.zeros((D,), jnp.float32).at[0].set(SQRT_K)
    inner_oy = _l_inner_last(o, y)
    dist = SQRT_K * _arccosh(-inner_oy / K)
    nomin = y + (1.0 / K) * inner_oy * o
    denom = jnp.sqrt(jnp.maximum(_l_inner_last(nomin, nomin), EPS))
    return dist * nomin / denom


def _centroid_weighted(xs, w):
    avg = w @ xs
    denom = jnp.sqrt(jnp.maximum(jnp.abs(-_l_inner_last(avg, avg)), EPS))
    return SQRT_K * avg / denom


# --------------------------------- wrapper ---------------------------------
@functools.partial(jax.jit, static_argnames=("momentum", "block_b"))
def lorentz_batchnorm_train(x, beta, gamma, running_mean, running_var,
                            *, momentum=0.1, block_b=1024):
    B, D = x.shape
    out_dtype = x.dtype

    # lane-dense layout: features on sublanes, batch on the 128-wide lane axis
    tb = min(block_b, _round_up(B, 128))
    bp = _round_up(B, tb)
    nb = bp // tb
    need_mask = bp != B

    xT = jnp.transpose(x)                                           # (D, B)
    if need_mask:
        # pad with Lorentz-origin columns (finite math; masked out of reductions)
        pad = jnp.zeros((D, bp - B), x.dtype).at[0, :].set(SQRT_K)
        xT = jnp.concatenate([xT, pad], axis=1)                     # (D, bp)

    beta_c = beta.reshape(D, 1).astype(jnp.float32)
    gamma_c = gamma.reshape(1, 1).astype(jnp.float32)

    x_spec = pl.BlockSpec((D, tb), lambda i: (0, i))
    def full(shape):
        return pl.BlockSpec(shape, lambda i: (0, 0))

    reduce_params = pltpu.CompilerParams(
        dimension_semantics=("arbitrary",), vmem_limit_bytes=VMEM_LIMIT_BYTES)
    apply_params = pltpu.CompilerParams(
        dimension_semantics=("parallel",), vmem_limit_bytes=VMEM_LIMIT_BYTES)

    # ---- pass 1: Lorentz centroid over the batch ----
    mean = pl.pallas_call(
        functools.partial(_centroid_kernel, batch=B, tb=tb, need_mask=need_mask),
        out_shape=jax.ShapeDtypeStruct((D, 1), jnp.float32),
        grid_spec=pltpu.PrefetchScalarGridSpec(
            num_scalar_prefetch=0, grid=(nb,),
            in_specs=[x_spec],
            out_specs=full((D, 1)),
            scratch_shapes=[pltpu.VMEM((D, 1), jnp.float32)]),
        compiler_params=reduce_params,
    )(xT)

    # ---- pass 2: Frechet variance ----
    var = pl.pallas_call(
        functools.partial(_variance_kernel, batch=B, tb=tb, need_mask=need_mask),
        out_shape=jax.ShapeDtypeStruct((1, 1), jnp.float32),
        grid_spec=pltpu.PrefetchScalarGridSpec(
            num_scalar_prefetch=0, grid=(nb,),
            in_specs=[full((D, 1)), x_spec],
            out_specs=full((1, 1)),
            scratch_shapes=[pltpu.VMEM((1, 1), jnp.float32)]),
        compiler_params=reduce_params,
    )(mean, xT)

    # ---- pass 3: tiled apply (parallel over batch tiles) ----
    outT = pl.pallas_call(
        _apply_kernel,
        out_shape=jax.ShapeDtypeStruct((D, bp), out_dtype),
        grid_spec=pltpu.PrefetchScalarGridSpec(
            num_scalar_prefetch=0, grid=(nb,),
            in_specs=[full((D, 1)), full((1, 1)), full((D, 1)), full((1, 1)), x_spec],
            out_specs=x_spec),
        compiler_params=apply_params,
    )(mean, var, beta_c, gamma_c, xT)

    out = jnp.transpose(outT[:, :B])                                # (B, D)

    # running-buffer updates (matches the torch.no_grad block)
    mean_v = mean[:, 0]                                             # (D,)
    var_s = var[0, 0]                                               # scalar
    rm_point = _expmap0(running_mean)                               # (D,)
    means = jnp.stack([rm_point, mean_v], axis=0)                   # (2, D)
    w = jnp.array([1.0 - momentum, momentum], jnp.float32)
    new_running_mean = _logmap0(_centroid_weighted(means, w))
    new_running_var = (1.0 - momentum) * running_var + momentum * var_s
    return out, new_running_mean, new_running_var


# ------------------------- pure-JAX reference (for checking) -------------------------
def _reference_forward(x, beta, gamma):
    x = x.astype(jnp.float32)
    B, D = x.shape
    o = jnp.zeros((D,), jnp.float32).at[0].set(SQRT_K)
    avg = jnp.mean(x, axis=0)
    mean = SQRT_K * avg / jnp.sqrt(jnp.maximum(jnp.abs(-_l_inner_last(avg, avg)), EPS))
    inner_mx = _l_inner_last(mean, x)                               # (B, 1)
    dist = SQRT_K * _arccosh(-inner_mx / K)
    nomin = x + (1.0 / K) * inner_mx * mean
    nomin_norm = jnp.sqrt(jnp.maximum(_l_inner_last(nomin, nomin), EPS))
    x_t = dist * nomin / nomin_norm
    x_t = x_t + (-SQRT_K * x_t[:, 0:1]) / (K + SQRT_K * mean[0]) * (mean + o)
    var = jnp.mean(jnp.sqrt(jnp.sum(x_t * x_t, axis=-1)))
    x_t = x_t * (gamma[0] / (var + EPS_BN))
    x_t = x_t + _l_inner_last(beta, x_t) / (K + SQRT_K * beta[0]) * (beta + o)
    u_norm = jnp.sqrt(jnp.maximum(_l_inner_last(x_t, x_t), EPS))
    theta = u_norm / SQRT_K
    out = jnp.cosh(theta) * beta + SQRT_K * jnp.sinh(theta) * x_t / u_norm
    return out, mean, var


if __name__ == "__main__":
    key = jax.random.PRNGKey(0)
    B, D = 300, 16  # batch = 300 (exercises tiling + padding), num_features = 16

    # Build valid points on the Lorentz manifold via expmap0 of random tangents.
    tangent = 0.5 * jax.random.normal(key, (B, D - 1), dtype=jnp.float32)
    tangent = jnp.concatenate([jnp.zeros((B, 1), jnp.float32), tangent], axis=-1)
    x = _expmap0(tangent).astype(jnp.float32)                       # (B, D)

    # Parameters / buffers as in __init__ (deterministic, synthetic).
    beta = jnp.zeros((D,), jnp.float32).at[0].set(SQRT_K)           # manifold.origin
    gamma = jnp.ones((1,), jnp.float32)
    running_mean = jnp.zeros((D,), jnp.float32)
    running_var = jnp.ones((1,), jnp.float32)

    out, new_rm, new_rv = lorentz_batchnorm_train(
        x, beta, gamma, running_mean, running_var, block_b=128)
    jax.block_until_ready((out, new_rm, new_rv))

    ref_out, _, _ = _reference_forward(x, beta, gamma)

    assert out.shape == (B, D) and new_rm.shape == (D,) and new_rv.shape == (1,)
    assert jnp.all(jnp.isfinite(out))
    assert jnp.allclose(out, ref_out, atol=1e-2, rtol=1e-2)
    print("KERNEL_OK")
</pallas_src>

<mosaic_0001>
module attributes {stable_mosaic.version = 11 : i64} {
  func.func @_centroid_kernel(%arg0: i32, %arg1: memref<16x128xf32, #tpu.memory_space<vmem>>, %arg2: memref<16x1xf32, #tpu.memory_space<vmem>>, %arg3: memref<16x1xf32, #tpu.memory_space<vmem>>) attributes {dimension_semantics = [#tpu.dimension_semantics<arbitrary>], iteration_bounds = array<i64: 3>, scalar_prefetch = 0 : i64, scratch_operands = 1 : i64, tpu.core_type = #tpu.core_type<tc>, window_params = [{transform_indices = @transform_0, window_bounds = array<i64: 16, 128>}, {pipeline_mode = #tpu.pipeline_mode<synchronous>, transform_indices = @transform_1, window_bounds = array<i64: 16, 1>}]} {
    %c0_i32 = arith.constant 0 : i32
    %0 = arith.cmpi eq, %arg0, %c0_i32 : i32
    %1 = arith.extui %0 : i1 to i32
    %c0_i32_0 = arith.constant 0 : i32
    %2 = arith.cmpi ne, %1, %c0_i32_0 : i32
    scf.if %2 {
      %cst_8 = arith.constant 0.000000e+00 : f32
      %22 = vector.broadcast %cst_8 : f32 to vector<16x1xf32>
      %c0_9 = arith.constant 0 : index
      %c0_10 = arith.constant 0 : index
      %23 = vector.load %arg3[%c0_9, %c0_10] : memref<16x1xf32, #tpu.memory_space<vmem>>, vector<16x1xf32>
      tpu.vector_store %arg3[%c0_9, %c0_10], %22 {strides = array<i32>} : memref<16x1xf32, #tpu.memory_space<vmem>>, vector<16x1xf32>,
    } else {
    }
    %c0 = arith.constant 0 : index
    %c0_1 = arith.constant 0 : index
    %3 = vector.load %arg1[%c0, %c0_1] : memref<16x128xf32, #tpu.memory_space<vmem>>, vector<16x128xf32>
    %4 = tpu.iota {dimensions = array<i32: 1>} : vector<1x128xi32>
    %c128_i32 = arith.constant 128 : i32
    %5 = arith.muli %arg0, %c128_i32 : i32
    %6 = vector.broadcast %5 : i32 to vector<1x128xi32>
    %7 = arith.addi %6, %4 : vector<1x128xi32>
    %c300_i32 = arith.constant 300 : i32
    %8 = vector.broadcast %c300_i32 : i32 to vector<1x128xi32>
    %9 = arith.cmpi slt, %7, %8 : vector<1x128xi32>
    %cst = arith.constant 0.000000e+00 : f32
    %10 = vector.shape_cast %9 : vector<1x128xi1> to vector<1x128xi1>
    %11 = vector.broadcast %10 : vector<1x128xi1> to vector<16x128xi1>
    %12 = vector.broadcast %cst : f32 to vector<16x128xf32>
    %13 = arith.select %11, %3, %12 : vector<16x128xi1>, vector<16x128xf32>
    %c0_2 = arith.constant 0 : index
    %c0_3 = arith.constant 0 : index
    %14 = vector.load %arg3[%c0_2, %c0_3] : memref<16x1xf32, #tpu.memory_space<vmem>>, vector<16x1xf32>
    %cst_4 = arith.constant dense<0.000000e+00> : vector<16xf32>
    %15 = vector.multi_reduction <add>, %13, %cst_4 [1] : vector<16x128xf32> to vector<16xf32>
    %16 = vector.shape_cast %15 : vector<16xf32> to vector<16x1xf32>
    %17 = arith.addf %14, %16 : vector<16x1xf32>
    %c0_5 = arith.constant 0 : index
    %c0_6 = arith.constant 0 : index
    %18 = vector.load %arg3[%c0_5, %c0_6] : memref<16x1xf32, #tpu.memory_space<vmem>>, vector<16x1xf32>
    tpu.vector_store %arg3[%c0_5, %c0_6], %17 {strides = array<i32>} : memref<16x1xf32, #tpu.memory_space<vmem>>, vector<16x1xf32>,
    %c2_i32 = arith.constant 2 : i32
    %19 = arith.cmpi eq, %arg0, %c2_i32 : i32
    %20 = arith.extui %19 : i1 to i32
    %c0_i32_7 = arith.constant 0 : i32
    %21 = arith.cmpi ne, %20, %c0_i32_7 : i32
    scf.if %21 {
      %c0_8 = arith.constant 0 : index
      %c0_9 = arith.constant 0 : index
      %22 = vector.load %arg3[%c0_8, %c0_9] : memref<16x1xf32, #tpu.memory_space<vmem>>, vector<16x1xf32>
      %cst_10 = arith.constant 0.00333333341 : f32
      %23 = vector.broadcast %cst_10 : f32 to vector<16x1xf32>
      %24 = arith.mulf %22, %23 : vector<16x1xf32>
      %25 = arith.mulf %24, %24 : vector<16x1xf32>
      %cst_11 = arith.constant dense<0.000000e+00> : vector<1xf32>
      %26 = vector.multi_reduction <add>, %25, %cst_11 [0] : vector<16x1xf32> to vector<1xf32>
      %27 = vector.shape_cast %26 : vector<1xf32> to vector<1x1xf32>
      %28 = vector.extract_strided_slice %24 {offsets = [0, 0], sizes = [1, 1], strides = [1, 1]} : vector<16x1xf32> to vector<1x1xf32>
      %cst_12 = arith.constant 2.000000e+00 : f32
      %29 = vector.broadcast %cst_12 : f32 to vector<1x1xf32>
      %30 = arith.mulf %29, %28 : vector<1x1xf32>
      %31 = vector.extract_strided_slice %24 {offsets = [0, 0], sizes = [1, 1], strides = [1, 1]} : vector<16x1xf32> to vector<1x1xf32>
      %32 = arith.mulf %30, %31 : vector<1x1xf32>
      %33 = arith.subf %27, %32 : vector<1x1xf32>
      %cst_13 = arith.constant 0.000000e+00 : f32
      %34 = vector.broadcast %cst_13 : f32 to vector<1x1xf32>
      %35 = arith.subf %34, %33 : vector<1x1xf32>
      %36 = math.absf %35 : vector<1x1xf32>
      %cst_14 = arith.constant 9.99999993E-9 : f32
      %37 = vector.broadcast %cst_14 : f32 to vector<1x1xf32>
      %38 = arith.maximumf %36, %37 : vector<1x1xf32>
      %39 = math.sqrt %38 : vector<1x1xf32>
      %cst_15 = arith.constant 1.000000e+00 : f32
      %40 = vector.broadcast %cst_15 : f32 to vector<16x1xf32>
      %41 = arith.mulf %40, %24 : vector<16x1xf32>
      %42 = vector.broadcast %39 : vector<1x1xf32> to vector<16x1xf32>
      %43 = arith.divf %41, %42 : vector<16x1xf32>
      %c0_16 = arith.constant 0 : index
      %c0_17 = arith.constant 0 : index
      %44 = vector.load %arg2[%c0_16, %c0_17] : memref<16x1xf32, #tpu.memory_space<vmem>>, vector<16x1xf32>
      tpu.vector_store %arg2[%c0_16, %c0_17], %43 {strides = array<i32>} : memref<16x1xf32, #tpu.memory_space<vmem>>, vector<16x1xf32>,
    } else {
    }
    return
  }
  func.func @transform_0(%arg0: i32) -> (i32, i32) {
    %c0_i32 = arith.constant 0 : i32
    %c0_i32_0 = arith.constant 0 : i32
    return %c0_i32, %arg0 : i32, i32
  }
  func.func @transform_1(%arg0: i32) -> (i32, i32) {
    %c0_i32 = arith.constant 0 : i32
    %c0_i32_0 = arith.constant 0 : i32
    %c0_i32_1 = arith.constant 0 : i32
    return %c0_i32, %c0_i32_0 : i32, i32
  }
}

module attributes {stable_mosaic.version = 11 : i64} {
  func.func @_variance_kernel(%arg0: i32, %arg1: memref<16x1xf32, #tpu.memory_space<vmem>>, %arg2: memref<16x128xf32, #tpu.memory_space<vmem>>, %arg3: memref<1x1xf32, #tpu.memory_space<vmem>>, %arg4: memref<1x1xf32, #tpu.memory_space<vmem>>) attributes {dimension_semantics = [#tpu.dimension_semantics<arbitrary>], iteration_bounds = array<i64: 3>, scalar_prefetch = 0 : i64, scratch_operands = 1 : i64, tpu.core_type = #tpu.core_type<tc>, window_params = [{pipeline_mode = #tpu.pipeline_mode<synchronous>, transform_indices = @transform_0, window_bounds = array<i64: 16, 1>}, {transform_indices = @transform_1, window_bounds = array<i64: 16, 128>}, {pipeline_mode = #tpu.pipeline_mode<synchronous>, transform_indices = @transform_2, window_bounds = array<i64: 1, 1>}]} {
    %c0_i32 = arith.constant 0 : i32
    %0 = arith.cmpi eq, %arg0, %c0_i32 : i32
    %1 = arith.extui %0 : i1 to i32
    %c0_i32_0 = arith.constant 0 : i32
    %2 = arith.cmpi ne, %1, %c0_i32_0 : i32
    scf.if %2 {
      %cst_29 = arith.constant 0.000000e+00 : f32
      %95 = vector.broadcast %cst_29 : f32 to vector<1x1xf32>
      %c0_30 = arith.constant 0 : index
      %c0_31 = arith.constant 0 : index
      %96 = vector.load %arg4[%c0_30, %c0_31] : memref<1x1xf32, #tpu.memory_space<vmem>>, vector<1x1xf32>
      tpu.vector_store %arg4[%c0_30, %c0_31], %95 {strides = array<i32>} : memref<1x1xf32, #tpu.memory_space<vmem>>, vector<1x1xf32>,
    } else {
    }
    %c0 = arith.constant 0 : index
    %c0_1 = arith.constant 0 : index
    %3 = vector.load %arg2[%c0, %c0_1] : memref<16x128xf32, #tpu.memory_space<vmem>>, vector<16x128xf32>
    %c0_2 = arith.constant 0 : index
    %c0_3 = arith.constant 0 : index
    %4 = vector.load %arg1[%c0_2, %c0_3] : memref<16x1xf32, #tpu.memory_space<vmem>>, vector<16x1xf32>
    %5 = tpu.iota {dimensions = array<i32: 0>} : vector<16x1xi32>
    %c0_i32_4 = arith.constant 0 : i32
    %6 = vector.broadcast %c0_i32_4 : i32 to vector<16x1xi32>
    %7 = arith.cmpi eq, %5, %6 : vector<16x1xi32>
    %cst = arith.constant 1.000000e+00 : f32
    %cst_5 = arith.constant 0.000000e+00 : f32
    %8 = vector.broadcast %cst : f32 to vector<16x1xf32>
    %9 = vector.broadcast %cst_5 : f32 to vector<16x1xf32>
    %10 = arith.select %7, %8, %9 : vector<16x1xi1>, vector<16x1xf32>
    %11 = vector.broadcast %4 : vector<16x1xf32> to vector<16x128xf32>
    %12 = arith.mulf %11, %3 : vector<16x128xf32>
    %cst_6 = arith.constant dense<0.000000e+00> : vector<128xf32>
    %13 = vector.multi_reduction <add>, %12, %cst_6 [0] : vector<16x128xf32> to vector<128xf32>
    %14 = vector.shape_cast %13 : vector<128xf32> to vector<1x128xf32>
    %15 = vector.extract_strided_slice %4 {offsets = [0, 0], sizes = [1, 1], strides = [1, 1]} : vector<16x1xf32> to vector<1x1xf32>
    %cst_7 = arith.constant 2.000000e+00 : f32
    %16 = vector.broadcast %cst_7 : f32 to vector<1x1xf32>
    %17 = arith.mulf %16, %15 : vector<1x1xf32>
    %18 = vector.extract_strided_slice %3 {offsets = [0, 0], sizes = [1, 128], strides = [1, 1]} : vector<16x128xf32> to vector<1x128xf32>
    %19 = vector.broadcast %17 : vector<1x1xf32> to vector<1x128xf32>
    %20 = arith.mulf %19, %18 : vector<1x128xf32>
    %21 = arith.subf %14, %20 : vector<1x128xf32>
    %cst_8 = arith.constant 0.000000e+00 : f32
    %22 = vector.broadcast %cst_8 : f32 to vector<1x128xf32>
    %23 = arith.subf %22, %21 : vector<1x128xf32>
    %cst_9 = arith.constant 1.000000e+00 : f32
    %24 = vector.broadcast %cst_9 : f32 to vector<1x128xf32>
    %25 = arith.divf %23, %24 : vector<1x128xf32>
    %cst_10 = arith.constant 1.00000012 : f32
    %26 = vector.broadcast %cst_10 : f32 to vector<1x128xf32>
    %27 = arith.maximumf %25, %26 : vector<1x128xf32>
    %28 = arith.mulf %27, %27 : vector<1x128xf32>
    %cst_11 = arith.constant 1.000000e+00 : f32
    %29 = vector.broadcast %cst_11 : f32 to vector<1x128xf32>
    %30 = arith.subf %28, %29 : vector<1x128xf32>
    %31 = math.sqrt %30 : vector<1x128xf32>
    %32 = arith.addf %27, %31 : vector<1x128xf32>
    %33 = math.log %32 : vector<1x128xf32>
    %cst_12 = arith.constant 1.000000e+00 : f32
    %34 = vector.broadcast %cst_12 : f32 to vector<1x128xf32>
    %35 = arith.mulf %34, %33 : vector<1x128xf32>
    %cst_13 = arith.constant 1.000000e+00 : f32
    %36 = vector.broadcast %cst_13 : f32 to vector<1x128xf32>
    %37 = arith.mulf %36, %21 : vector<1x128xf32>
    %38 = vector.broadcast %37 : vector<1x128xf32> to vector<16x128xf32>
    %39 = vector.broadcast %4 : vector<16x1xf32> to vector<16x128xf32>
    %40 = arith.mulf %38, %39 : vector<16x128xf32>
    %41 = arith.addf %3, %40 : vector<16x128xf32>
    %42 = arith.mulf %41, %41 : vector<16x128xf32>
    %cst_14 = arith.constant dense<0.000000e+00> : vector<128xf32>
    %43 = vector.multi_reduction <add>, %42, %cst_14 [0] : vector<16x128xf32> to vector<128xf32>
    %44 = vector.shape_cast %43 : vector<128xf32> to vector<1x128xf32>
    %45 = vector.extract_strided_slice %41 {offsets = [0, 0], sizes = [1, 128], strides = [1, 1]} : vector<16x128xf32> to vector<1x128xf32>
    %cst_15 = arith.constant 2.000000e+00 : f32
    %46 = vector.broadcast %cst_15 : f32 to vector<1x128xf32>
    %47 = arith.mulf %46, %45 : vector<1x128xf32>
    %48 = vector.extract_strided_slice %41 {offsets = [0, 0], sizes = [1, 128], strides = [1, 1]} : vector<16x128xf32> to vector<1x128xf32>
    %49 = arith.mulf %47, %48 : vector<1x128xf32>
    %50 = arith.subf %44, %49 : vector<1x128xf32>
    %cst_16 = arith.constant 9.99999993E-9 : f32
    %51 = vector.broadcast %cst_16 : f32 to vector<1x128xf32>
    %52 = arith.maximumf %50, %51 : vector<1x128xf32>
    %53 = math.sqrt %52 : vector<1x128xf32>
    %54 = tpu.reciprocal %53 {approx = true} : vector<1x128xf32> -> vector<1x128xf32>
    %55 = arith.mulf %35, %54 : vector<1x128xf32>
    %56 = vector.broadcast %55 : vector<1x128xf32> to vector<16x128xf32>
    %57 = arith.mulf %56, %41 : vector<16x128xf32>
    %58 = vector.extract_strided_slice %4 {offsets = [0, 0], sizes = [1, 1], strides = [1, 1]} : vector<16x1xf32> to vector<1x1xf32>
    %cst_17 = arith.constant 1.000000e+00 : f32
    %59 = vector.broadcast %cst_17 : f32 to vector<1x1xf32>
    %60 = arith.mulf %59, %58 : vector<1x1xf32>
    %cst_18 = arith.constant 1.000000e+00 : f32
    %61 = vector.broadcast %cst_18 : f32 to vector<1x1xf32>
    %62 = arith.addf %61, %60 : vector<1x1xf32>
    %cst_19 = arith.constant 1.000000e+00 : f32
    %63 = vector.broadcast %cst_19 : f32 to vector<1x1xf32>
    %64 = arith.divf %63, %62 : vector<1x1xf32>
    %65 = vector.extract_strided_slice %57 {offsets = [0, 0], sizes = [1, 128], strides = [1, 1]} : vector<16x128xf32> to vector<1x128xf32>
    %cst_20 = arith.constant -1.000000e+00 : f32
    %66 = vector.broadcast %cst_20 : f32 to vector<1x128xf32>
    %67 = arith.mulf %66, %65 : vector<1x128xf32>
    %68 = vector.broadcast %64 : vector<1x1xf32> to vector<1x128xf32>
    %69 = arith.mulf %67, %68 : vector<1x128xf32>
    %70 = arith.addf %4, %10 : vector<16x1xf32>
    %71 = vector.broadcast %69 : vector<1x128xf32> to vector<16x128xf32>
    %72 = vector.broadcast %70 : vector<16x1xf32> to vector<16x128xf32>
    %73 = arith.mulf %71, %72 : vector<16x128xf32>
    %74 = arith.addf %57, %73 : vector<16x128xf32>
    %75 = arith.mulf %74, %74 : vector<16x128xf32>
    %cst_21 = arith.constant dense<0.000000e+00> : vector<128xf32>
    %76 = vector.multi_reduction <add>, %75, %cst_21 [0] : vector<16x128xf32> to vector<128xf32>
    %77 = vector.shape_cast %76 : vector<128xf32> to vector<1x128xf32>
    %78 = math.sqrt %77 : vector<1x128xf32>
    %79 = tpu.iota {dimensions = array<i32: 1>} : vector<1x128xi32>
    %c128_i32 = arith.constant 128 : i32
    %80 = arith.muli %arg0, %c128_i32 : i32
    %81 = vector.broadcast %80 : i32 to vector<1x128xi32>
    %82 = arith.addi %81, %79 : vector<1x128xi32>
    %c300_i32 = arith.constant 300 : i32
    %83 = vector.broadcast %c300_i32 : i32 to vector<1x128xi32>
    %84 = arith.cmpi slt, %82, %83 : vector<1x128xi32>
    %cst_22 = arith.constant 0.000000e+00 : f32
    %85 = vector.broadcast %cst_22 : f32 to vector<1x128xf32>
    %86 = arith.select %84, %78, %85 : vector<1x128xi1>, vector<1x128xf32>
    %c0_23 = arith.constant 0 : index
    %c0_24 = arith.constant 0 : index
    %87 = vector.load %arg4[%c0_23, %c0_24] : memref<1x1xf32, #tpu.memory_space<vmem>>, vector<1x1xf32>
    %cst_25 = arith.constant dense<0.000000e+00> : vector<1xf32>
    %88 = vector.multi_reduction <add>, %86, %cst_25 [1] : vector<1x128xf32> to vector<1xf32>
    %89 = vector.shape_cast %88 : vector<1xf32> to vector<1x1xf32>
    %90 = arith.addf %87, %89 : vector<1x1xf32>
    %c0_26 = arith.constant 0 : index
    %c0_27 = arith.constant 0 : index
    %91 = vector.load %arg4[%c0_26, %c0_27] : memref<1x1xf32, #tpu.memory_space<vmem>>, vector<1x1xf32>
    tpu.vector_store %arg4[%c0_26, %c0_27], %90 {strides = array<i32>} : memref<1x1xf32, #tpu.memory_space<vmem>>, vector<1x1xf32>,
    %c2_i32 = arith.constant 2 : i32
    %92 = arith.cmpi eq, %arg0, %c2_i32 : i32
    %93 = arith.extui %92 : i1 to i32
    %c0_i32_28 = arith.constant 0 : i32
    %94 = arith.cmpi ne, %93, %c0_i32_28 : i32
    scf.if %94 {
      %c0_29 = arith.constant 0 : index
      %c0_30 = arith.constant 0 : index
      %95 = vector.load %arg4[%c0_29, %c0_30] : memref<1x1xf32, #tpu.memory_space<vmem>>, vector<1x1xf32>
      %cst_31 = arith.constant 0.00333333341 : f32
      %96 = vector.broadcast %cst_31 : f32 to vector<1x1xf32>
      %97 = arith.mulf %95, %96 : vector<1x1xf32>
      %c0_32 = arith.constant 0 : index
      %c0_33 = arith.constant 0 : index
      %98 = vector.load %arg3[%c0_32, %c0_33] : memref<1x1xf32, #tpu.memory_space<vmem>>, vector<1x1xf32>
      tpu.vector_store %arg3[%c0_32, %c0_33], %97 {strides = array<i32>} : memref<1x1xf32, #tpu.memory_space<vmem>>, vector<1x1xf32>,
    } else {
    }
    return
  }
  func.func @transform_0(%arg0: i32) -> (i32, i32) {
    %c0_i32 = arith.constant 0 : i32
    %c0_i32_0 = arith.constant 0 : i32
    %c0_i32_1 = arith.constant 0 : i32
    return %c0_i32, %c0_i32_0 : i32, i32
  }
  func.func @transform_1(%arg0: i32) -> (i32, i32) {
    %c0_i32 = arith.constant 0 : i32
    %c0_i32_0 = arith.constant 0 : i32
    return %c0_i32, %arg0 : i32, i32
  }
  func.func @transform_2(%arg0: i32) -> (i32, i32) {
    %c0_i32 = arith.constant 0 : i32
    %c0_i32_0 = arith.constant 0 : i32
    %c0_i32_1 = arith.constant 0 : i32
    return %c0_i32, %c0_i32_0 : i32, i32
  }
}

module attributes {stable_mosaic.version = 11 : i64} {
  func.func @_apply_kernel(%arg0: i32, %arg1: memref<16x1xf32, #tpu.memory_space<vmem>>, %arg2: memref<1x1xf32, #tpu.memory_space<vmem>>, %arg3: memref<16x1xf32, #tpu.memory_space<vmem>>, %arg4: memref<1x1xf32, #tpu.memory_space<vmem>>, %arg5: memref<16x128xf32, #tpu.memory_space<vmem>>, %arg6: memref<16x128xf32, #tpu.memory_space<vmem>>) attributes {dimension_semantics = [#tpu.dimension_semantics<parallel>], iteration_bounds = array<i64: 3>, scalar_prefetch = 0 : i64, scratch_operands = 0 : i64, tpu.core_type = #tpu.core_type<tc>, window_params = [{pipeline_mode = #tpu.pipeline_mode<synchronous>, transform_indices = @transform_0, window_bounds = array<i64: 16, 1>}, {pipeline_mode = #tpu.pipeline_mode<synchronous>, transform_indices = @transform_1, window_bounds = array<i64: 1, 1>}, {pipeline_mode = #tpu.pipeline_mode<synchronous>, transform_indices = @transform_2, window_bounds = array<i64: 16, 1>}, {pipeline_mode = #tpu.pipeline_mode<synchronous>, transform_indices = @transform_3, window_bounds = array<i64: 1, 1>}, {transform_indices = @transform_4, window_bounds = array<i64: 16, 128>}, {transform_indices = @transform_5, window_bounds = array<i64: 16, 128>}]} {
    %c0 = arith.constant 0 : index
    %c0_0 = arith.constant 0 : index
    %0 = vector.load %arg5[%c0, %c0_0] : memref<16x128xf32, #tpu.memory_space<vmem>>, vector<16x128xf32>
    %c0_1 = arith.constant 0 : index
    %c0_2 = arith.constant 0 : index
    %1 = vector.load %arg1[%c0_1, %c0_2] : memref<16x1xf32, #tpu.memory_space<vmem>>, vector<16x1xf32>
    %c0_3 = arith.constant 0 : index
    %c0_4 = arith.constant 0 : index
    %2 = vector.load %arg3[%c0_3, %c0_4] : memref<16x1xf32, #tpu.memory_space<vmem>>, vector<16x1xf32>
    %c0_5 = arith.constant 0 : index
    %c0_6 = arith.constant 0 : index
    %3 = vector.load %arg4[%c0_5, %c0_6] : memref<1x1xf32, #tpu.memory_space<vmem>>, vector<1x1xf32>
    %c0_7 = arith.constant 0 : index
    %c0_8 = arith.constant 0 : index
    %4 = vector.load %arg2[%c0_7, %c0_8] : memref<1x1xf32, #tpu.memory_space<vmem>>, vector<1x1xf32>
    %5 = tpu.iota {dimensions = array<i32: 0>} : vector<16x1xi32>
    %c0_i32 = arith.constant 0 : i32
    %6 = vector.broadcast %c0_i32 : i32 to vector<16x1xi32>
    %7 = arith.cmpi eq, %5, %6 : vector<16x1xi32>
    %cst = arith.constant 1.000000e+00 : f32
    %cst_9 = arith.constant 0.000000e+00 : f32
    %8 = vector.broadcast %cst : f32 to vector<16x1xf32>
    %9 = vector.broadcast %cst_9 : f32 to vector<16x1xf32>
    %10 = arith.select %7, %8, %9 : vector<16x1xi1>, vector<16x1xf32>
    %11 = vector.broadcast %1 : vector<16x1xf32> to vector<16x128xf32>
    %12 = arith.mulf %11, %0 : vector<16x128xf32>
    %cst_10 = arith.constant dense<0.000000e+00> : vector<128xf32>
    %13 = vector.multi_reduction <add>, %12, %cst_10 [0] : vector<16x128xf32> to vector<128xf32>
    %14 = vector.shape_cast %13 : vector<128xf32> to vector<1x128xf32>
    %15 = vector.extract_strided_slice %1 {offsets = [0, 0], sizes = [1, 1], strides = [1, 1]} : vector<16x1xf32> to vector<1x1xf32>
    %cst_11 = arith.constant 2.000000e+00 : f32
    %16 = vector.broadcast %cst_11 : f32 to vector<1x1xf32>
    %17 = arith.mulf %16, %15 : vector<1x1xf32>
    %18 = vector.extract_strided_slice %0 {offsets = [0, 0], sizes = [1, 128], strides = [1, 1]} : vector<16x128xf32> to vector<1x128xf32>
    %19 = vector.broadcast %17 : vector<1x1xf32> to vector<1x128xf32>
    %20 = arith.mulf %19, %18 : vector<1x128xf32>
    %21 = arith.subf %14, %20 : vector<1x128xf32>
    %cst_12 = arith.constant 0.000000e+00 : f32
    %22 = vector.broadcast %cst_12 : f32 to vector<1x128xf32>
    %23 = arith.subf %22, %21 : vector<1x128xf32>
    %cst_13 = arith.constant 1.000000e+00 : f32
    %24 = vector.broadcast %cst_13 : f32 to vector<1x128xf32>
    %25 = arith.divf %23, %24 : vector<1x128xf32>
    %cst_14 = arith.constant 1.00000012 : f32
    %26 = vector.broadcast %cst_14 : f32 to vector<1x128xf32>
    %27 = arith.maximumf %25, %26 : vector<1x128xf32>
    %28 = arith.mulf %27, %27 : vector<1x128xf32>
    %cst_15 = arith.constant 1.000000e+00 : f32
    %29 = vector.broadcast %cst_15 : f32 to vector<1x128xf32>
    %30 = arith.subf %28, %29 : vector<1x128xf32>
    %31 = math.sqrt %30 : vector<1x128xf32>
    %32 = arith.addf %27, %31 : vector<1x128xf32>
    %33 = math.log %32 : vector<1x128xf32>
    %cst_16 = arith.constant 1.000000e+00 : f32
    %34 = vector.broadcast %cst_16 : f32 to vector<1x128xf32>
    %35 = arith.mulf %34, %33 : vector<1x128xf32>
    %cst_17 = arith.constant 1.000000e+00 : f32
    %36 = vector.broadcast %cst_17 : f32 to vector<1x128xf32>
    %37 = arith.mulf %36, %21 : vector<1x128xf32>
    %38 = vector.broadcast %37 : vector<1x128xf32> to vector<16x128xf32>
    %39 = vector.broadcast %1 : vector<16x1xf32> to vector<16x128xf32>
    %40 = arith.mulf %38, %39 : vector<16x128xf32>
    %41 = arith.addf %0, %40 : vector<16x128xf32>
    %42 = arith.mulf %41, %41 : vector<16x128xf32>
    %cst_18 = arith.constant dense<0.000000e+00> : vector<128xf32>
    %43 = vector.multi_reduction <add>, %42, %cst_18 [0] : vector<16x128xf32> to vector<128xf32>
    %44 = vector.shape_cast %43 : vector<128xf32> to vector<1x128xf32>
    %45 = vector.extract_strided_slice %41 {offsets = [0, 0], sizes = [1, 128], strides = [1, 1]} : vector<16x128xf32> to vector<1x128xf32>
    %cst_19 = arith.constant 2.000000e+00 : f32
    %46 = vector.broadcast %cst_19 : f32 to vector<1x128xf32>
    %47 = arith.mulf %46, %45 : vector<1x128xf32>
    %48 = vector.extract_strided_slice %41 {offsets = [0, 0], sizes = [1, 128], strides = [1, 1]} : vector<16x128xf32> to vector<1x128xf32>
    %49 = arith.mulf %47, %48 : vector<1x128xf32>
    %50 = arith.subf %44, %49 : vector<1x128xf32>
    %cst_20 = arith.constant 9.99999993E-9 : f32
    %51 = vector.broadcast %cst_20 : f32 to vector<1x128xf32>
    %52 = arith.maximumf %50, %51 : vector<1x128xf32>
    %53 = math.sqrt %52 : vector<1x128xf32>
    %54 = tpu.reciprocal %53 {approx = true} : vector<1x128xf32> -> vector<1x128xf32>
    %55 = arith.mulf %35, %54 : vector<1x128xf32>
    %56 = vector.broadcast %55 : vector<1x128xf32> to vector<16x128xf32>
    %57 = arith.mulf %56, %41 : vector<16x128xf32>
    %58 = vector.extract_strided_slice %1 {offsets = [0, 0], sizes = [1, 1], strides = [1, 1]} : vector<16x1xf32> to vector<1x1xf32>
    %cst_21 = arith.constant 1.000000e+00 : f32
    %59 = vector.broadcast %cst_21 : f32 to vector<1x1xf32>
    %60 = arith.mulf %59, %58 : vector<1x1xf32>
    %cst_22 = arith.constant 1.000000e+00 : f32
    %61 = vector.broadcast %cst_22 : f32 to vector<1x1xf32>
    %62 = arith.addf %61, %60 : vector<1x1xf32>
    %cst_23 = arith.constant 1.000000e+00 : f32
    %63 = vector.broadcast %cst_23 : f32 to vector<1x1xf32>
    %64 = arith.divf %63, %62 : vector<1x1xf32>
    %65 = vector.extract_strided_slice %57 {offsets = [0, 0], sizes = [1, 128], strides = [1, 1]} : vector<16x128xf32> to vector<1x128xf32>
    %cst_24 = arith.constant -1.000000e+00 : f32
    %66 = vector.broadcast %cst_24 : f32 to vector<1x128xf32>
    %67 = arith.mulf %66, %65 : vector<1x128xf32>
    %68 = vector.broadcast %64 : vector<1x1xf32> to vector<1x128xf32>
    %69 = arith.mulf %67, %68 : vector<1x128xf32>
    %70 = arith.addf %1, %10 : vector<16x1xf32>
    %71 = vector.broadcast %69 : vector<1x128xf32> to vector<16x128xf32>
    %72 = vector.broadcast %70 : vector<16x1xf32> to vector<16x128xf32>
    %73 = arith.mulf %71, %72 : vector<16x128xf32>
    %74 = arith.addf %57, %73 : vector<16x128xf32>
    %cst_25 = arith.constant 9.99999974E-6 : f32
    %75 = vector.broadcast %cst_25 : f32 to vector<1x1xf32>
    %76 = arith.addf %4, %75 : vector<1x1xf32>
    %cst_26 = arith.constant 1.000000e+00 : f32
    %77 = vector.broadcast %cst_26 : f32 to vector<1x1xf32>
    %78 = arith.divf %77, %76 : vector<1x1xf32>
    %79 = arith.mulf %3, %78 : vector<1x1xf32>
    %80 = vector.broadcast %79 : vector<1x1xf32> to vector<16x128xf32>
    %81 = arith.mulf %74, %80 : vector<16x128xf32>
    %82 = vector.extract_strided_slice %2 {offsets = [0, 0], sizes = [1, 1], strides = [1, 1]} : vector<16x1xf32> to vector<1x1xf32>
    %cst_27 = arith.constant 1.000000e+00 : f32
    %83 = vector.broadcast %cst_27 : f32 to vector<1x1xf32>
    %84 = arith.mulf %83, %82 : vector<1x1xf32>
    %cst_28 = arith.constant 1.000000e+00 : f32
    %85 = vector.broadcast %cst_28 : f32 to vector<1x1xf32>
    %86 = arith.addf %85, %84 : vector<1x1xf32>
    %cst_29 = arith.constant 1.000000e+00 : f32
    %87 = vector.broadcast %cst_29 : f32 to vector<1x1xf32>
    %88 = arith.divf %87, %86 : vector<1x1xf32>
    %89 = vector.broadcast %2 : vector<16x1xf32> to vector<16x128xf32>
    %90 = arith.mulf %89, %81 : vector<16x128xf32>
    %cst_30 = arith.constant dense<0.000000e+00> : vector<128xf32>
    %91 = vector.multi_reduction <add>, %90, %cst_30 [0] : vector<16x128xf32> to vector<128xf32>
    %92 = vector.shape_cast %91 : vector<128xf32> to vector<1x128xf32>
    %93 = vector.extract_strided_slice %2 {offsets = [0, 0], sizes = [1, 1], strides = [1, 1]} : vector<16x1xf32> to vector<1x1xf32>
    %cst_31 = arith.constant 2.000000e+00 : f32
    %94 = vector.broadcast %cst_31 : f32 to vector<1x1xf32>
    %95 = arith.mulf %94, %93 : vector<1x1xf32>
    %96 = vector.extract_strided_slice %81 {offsets = [0, 0], sizes = [1, 128], strides = [1, 1]} : vector<16x128xf32> to vector<1x128xf32>
    %97 = vector.broadcast %95 : vector<1x1xf32> to vector<1x128xf32>
    %98 = arith.mulf %97, %96 : vector<1x128xf32>
    %99 = arith.subf %92, %98 : vector<1x128xf32>
    %100 = vector.broadcast %88 : vector<1x1xf32> to vector<1x128xf32>
    %101 = arith.mulf %99, %100 : vector<1x128xf32>
    %102 = arith.addf %2, %10 : vector<16x1xf32>
    %103 = vector.broadcast %101 : vector<1x128xf32> to vector<16x128xf32>
    %104 = vector.broadcast %102 : vector<16x1xf32> to vector<16x128xf32>
    %105 = arith.mulf %103, %104 : vector<16x128xf32>
    %106 = arith.addf %81, %105 : vector<16x128xf32>
    %107 = arith.mulf %106, %106 : vector<16x128xf32>
    %cst_32 = arith.constant dense<0.000000e+00> : vector<128xf32>
    %108 = vector.multi_reduction <add>, %107, %cst_32 [0] : vector<16x128xf32> to vector<128xf32>
    %109 = vector.shape_cast %108 : vector<128xf32> to vector<1x128xf32>
    %110 = vector.extract_strided_slice %106 {offsets = [0, 0], sizes = [1, 128], strides = [1, 1]} : vector<16x128xf32> to vector<1x128xf32>
    %cst_33 = arith.constant 2.000000e+00 : f32
    %111 = vector.broadcast %cst_33 : f32 to vector<1x128xf32>
    %112 = arith.mulf %111, %110 : vector<1x128xf32>
    %113 = vector.extract_strided_slice %106 {offsets = [0, 0], sizes = [1, 128], strides = [1, 1]} : vector<16x128xf32> to vector<1x128xf32>
    %114 = arith.mulf %112, %113 : vector<1x128xf32>
    %115 = arith.subf %109, %114 : vector<1x128xf32>
    %cst_34 = arith.constant 9.99999993E-9 : f32
    %116 = vector.broadcast %cst_34 : f32 to vector<1x128xf32>
    %117 = arith.maximumf %115, %116 : vector<1x128xf32>
    %118 = math.sqrt %117 : vector<1x128xf32>
    %cst_35 = arith.constant 1.000000e+00 : f32
    %119 = vector.broadcast %cst_35 : f32 to vector<1x128xf32>
    %120 = arith.mulf %118, %119 : vector<1x128xf32>
    %121 = math.exp %120 : vector<1x128xf32>
    %122 = tpu.reciprocal %121 {approx = true} : vector<1x128xf32> -> vector<1x128xf32>
    %123 = arith.addf %121, %122 : vector<1x128xf32>
    %cst_36 = arith.constant 5.000000e-01 : f32
    %124 = vector.broadcast %cst_36 : f32 to vector<1x128xf32>
    %125 = arith.mulf %124, %123 : vector<1x128xf32>
    %126 = arith.subf %121, %122 : vector<1x128xf32>
    %cst_37 = arith.constant 5.000000e-01 : f32
    %127 = vector.broadcast %cst_37 : f32 to vector<1x128xf32>
    %128 = arith.mulf %127, %126 : vector<1x128xf32>
    %cst_38 = arith.constant 1.000000e+00 : f32
    %129 = vector.broadcast %cst_38 : f32 to vector<1x128xf32>
    %130 = arith.mulf %129, %128 : vector<1x128xf32>
    %131 = tpu.reciprocal %118 {approx = true} : vector<1x128xf32> -> vector<1x128xf32>
    %132 = arith.mulf %130, %131 : vector<1x128xf32>
    %133 = vector.broadcast %125 : vector<1x128xf32> to vector<16x128xf32>
    %134 = vector.broadcast %2 : vector<16x1xf32> to vector<16x128xf32>
    %135 = arith.mulf %133, %134 : vector<16x128xf32>
    %136 = vector.broadcast %132 : vector<1x128xf32> to vector<16x128xf32>
    %137 = arith.mulf %136, %106 : vector<16x128xf32>
    %138 = arith.addf %135, %137 : vector<16x128xf32>
    %c0_39 = arith.constant 0 : index
    %c0_40 = arith.constant 0 : index
    %139 = vector.load %arg6[%c0_39, %c0_40] : memref<16x128xf32, #tpu.memory_space<vmem>>, vector<16x128xf32>
    tpu.vector_store %arg6[%c0_39, %c0_40], %138 {strides = array<i32>} : memref<16x128xf32, #tpu.memory_space<vmem>>, vector<16x128xf32>,
    return
  }
  func.func @transform_0(%arg0: i32) -> (i32, i32) {
    %c0_i32 = arith.constant 0 : i32
    %c0_i32_0 = arith.constant 0 : i32
    %c0_i32_1 = arith.constant 0 : i32
    return %c0_i32, %c0_i32_0 : i32, i32
  }
  func.func @transform_1(%arg0: i32) -> (i32, i32) {
    %c0_i32 = arith.constant 0 : i32
    %c0_i32_0 = arith.constant 0 : i32
    %c0_i32_1 = arith.constant 0 : i32
    return %c0_i32, %c0_i32_0 : i32, i32
  }
  func.func @transform_2(%arg0: i32) -> (i32, i32) {
    %c0_i32 = arith.constant 0 : i32
    %c0_i32_0 = arith.constant 0 : i32
    %c0_i32_1 = arith.constant 0 : i32
    return %c0_i32, %c0_i32_0 : i32, i32
  }
  func.func @transform_3(%arg0: i32) -> (i32, i32) {
    %c0_i32 = arith.constant 0 : i32
    %c0_i32_0 = arith.constant 0 : i32
    %c0_i32_1 = arith.constant 0 : i32
    return %c0_i32, %c0_i32_0 : i32, i32
  }
  func.func @transform_4(%arg0: i32) -> (i32, i32) {
    %c0_i32 = arith.constant 0 : i32
    %c0_i32_0 = arith.constant 0 : i32
    return %c0_i32, %arg0 : i32, i32
  }
  func.func @transform_5(%arg0: i32) -> (i32, i32) {
    %c0_i32 = arith.constant 0 : i32
    %c0_i32_0 = arith.constant 0 : i32
    return %c0_i32, %arg0 : i32, i32
  }
}

</mosaic_0001>

<bundles_post_ra>
// kernel: lorentz_batchnorm_train.3
= control target key start
LH: loop header
LB: loop body
LE: loop exit
PB: predicated region body
PF: predicated region fallthrough
CT: control target
= control target key end

     0   :  { %s321_s6 = smov 0   ;;  %s323_s7 = smov 0   ;;  %s375_s0 = inlined_call_operand.vmem [shape: f32[16,384], index: 0, kind: input, shape index: {}]   ;;  %s376_s1 = inlined_call_operand.vmem [shape: f32[16,1], index: 1, kind: output, shape index: {}]  }
   0x1   :  { %s325_s8 = smov 0  }
   0x2 LB: > { %s334_s9 = sadd.s32 4294967295, %s308_s8   ;;  %s336_s10 = sadd.s32 1, %s308_s8   ;;  %s308_s8 = sphi %s325_s8, %s379_s8   ;;  %s304_s7 = sphi %s323_s7, %s378_s7   ;;  %s300_s6 = sphi %s321_s6, %s377_s6  }
   0x3   : > { %s15_s11 = ssub.s32 %s308_s8, %s336_s10  ;;  %s18_s12 = sadd.s32 1, %s304_s7 }
   0x4   : > { %p16_p0 = scmp.eq.s32.totalorder %s15_s11, 0  ;;  %p25_p1 = scmp.ne.s32.totalorder %s304_s7, %s300_s6 }
   0x5   : > { %p26_p2 = scmp.eq.s32.totalorder %s308_s8, 0  ;;  %p247_p4 = scmp.ge.s32.totalorder %s308_s8, 3 }
   0x6   : > { %s343_s13 = scalar_select %p16_p0, %s304_s7, %s18_s12  }
   0x7   : > { %p27_p3 = por %p26_p2, %p25_p1  ;;  %72 = sbr.rel (%p247_p4) target bundleno = 21 (0x15), region = 16 }
   0xe   : > { %75 = sbr.rel (!%p27_p3) target bundleno = 21 (0x15), region = 20  ;;  %s77_s14 = sand.u32 (%p27_p3), 1, %s304_s7  }
   0xf   : > { %s249_s15 = sshll.u32 (%p27_p3), %s308_s8, 3  ;;  %s248_s16 = sshll.u32 (%p27_p3), %s77_s14, 4 }
  0x10   : > { %s81_s19 = scalar_lea.vmem (%p27_p3), %s375_s0, %s249_s15  ;;  %s79_s20 = scalar_lea.vmem (%p27_p3), [#allocation3], %s248_s16 }
  0x11   : > { %v111_v0 = vld [vmem:[%s81_s19] sm:$0xff] (%p27_p3)  ;;  %v113_v1 = vld [vmem:[%s81_s19 + $0x18] sm:$0xff] (%p27_p3) }
  0x12   : > { %112 = vst [vmem:[%s79_s20] sm:$0xff] (%p27_p3), %v111_v0  ;;  %114 = vst [vmem:[%s79_s20 + $0x8] sm:$0xff] (%p27_p3), %v113_v1 }
  0x15 PF: > { %p250_p5 = scmp.ge.s32.totalorder %s308_s8, 1  ;;  %p119_p6 = scmp.lt.s32.totalorder %s308_s8, 4 }
  0x17   : > { %p120_p7 = pnand %p250_p5, %p119_p6 }
  0x18   : > { %s126_s21 = sand.u32 (!%p120_p7), 1, %s300_s6   ;;  %p252_p8 = scmp.ne.s32.totalorder (!%p120_p7), %s334_s9, 0 }
  0x19   : > { %123 = sbr.rel (%p120_p7) target bundleno = 261 (0x105), region = 58  ;;  %s251_s22 = sshll.u32 (!%p120_p7), %s126_s21, 4 }
  0x1a   : > { %s128_s23 = scalar_lea.vmem (!%p120_p7), [#allocation3], %s251_s22 }
  0x20   : > { %143 = sbr.rel (%p252_p8) target bundleno = 39 (0x27), region = 66  ;;  %vm144_vm0 = vcmask (!%p252_p8), 7168   ;;  %v310_v2 = vmov (!%p252_p8), 0.0  }
  0x21   : > { %145 = vst.msk [vmem:[#allocation2] sm:$0xff] (!%p252_p8), %vm144_vm0, %v310_v2  ;;  %146 = vst.msk [vmem:[#allocation2 + $0x8] sm:$0xff] (!%p252_p8), %vm144_vm0, %v310_v2 }
  0x27 PF: > { %v149_v3 = vlaneseq  ;;  %s253_s24 = sshll.u32 %s334_s9, 7  ;;  %v147_v6 = vld [vmem:[%s128_s23] sm:$0xff]  ;;  %v148_v8 = vld [vmem:[%s128_s23 + $0x8] sm:$0xff]  ;;  %vm167_vm2 = vcmask 7168   ;;  %p254_p9 = scmp.ne.s32.totalorder %s334_s9, 2 }
  0x28   : > { %v152_v4 = vstv %s253_s24  ;;  %v159_v11 = vld [vmem:[#allocation2] sm:$0xff]  ;;  %v160_v14 = vld [vmem:[#allocation2 + $0x8] sm:$0xff] }
  0x29   : > { %v150_v5 = vand.u32 127, %v149_v3  ;;  %v203_v38 = vshrl.u32 (!%p254_p9), %v149_v3, 7 }
  0x2b   : > { %v153_v7 = vadd.s32 %v152_v4, %v150_v5  ;;  %v204_v42 = vsub.s32 (!%p254_p9), 0, %v203_v38 }
  0x2d   : > { %vm154_vm1 = vcmp.lt.s32.totalorder %v153_v7, 300 }
  0x2e   : > { %v157_v9 = vsel %vm154_vm1, %v147_v6, 0.0  ;;  %v158_v10 = vsel %vm154_vm1, %v148_v8, 0.0 }
  0x2f   : > { %161 = vadd.xlane.f32.xlu0 %v157_v9 }
  0x33   : > { %163 = vadd.xlane.f32.xlu0 %v158_v10 }
  0xbc   : > { %v162_v12 = vpop.xlane.xlu0 %161 }
  0xbd   : > { %v165_v13 = vadd.f32 %v162_v12, %v159_v11  ;;  %173 = sbr.rel (%p254_p9) target bundleno = 261 (0x105), region = 70 }
  0xbf   : > { %168 = vst.msk [vmem:[#allocation2] sm:$0xff] %vm167_vm2, %v165_v13 }
  0xc0   : > { %v164_v15 = vpop.xlane.xlu0 %163 }
  0xc1   : > { %v166_v16 = vadd.f32 %v164_v15, %v160_v14 }
  0xc3   : > { %169 = vst.msk [vmem:[#allocation2 + $0x8] sm:$0xff] %vm167_vm2, %v166_v16 }
  0xc6   : > { %v174_v17 = vld [vmem:[#allocation2] sm:$0xff] }
  0xc7   : > { %v176_v19 = vmul.f32 0.0033333334, %v174_v17 }
  0xc9   : > { %v178_v21 = vmul.f32 %v176_v19, %v176_v19  ;;  %v189_v29 = vmul.f32 2.0, %v176_v19 }
  0xca   : > { %v175_v18 = vld [vmem:[#allocation2 + $0x8] sm:$0xff] }
  0xcb   : > { %v177_v20 = vmul.f32 0.0033333334, %v175_v18  ;;  %v180_v23 = vsel %vm167_vm2, %v178_v21, 0.0  ;;  %v190_v32 = vmul.f32 %v189_v29, %v176_v19 }
  0xcd   : > { %v179_v22 = vmul.f32 %v177_v20, %v177_v20 }
  0xcf   : > { %v181_v24 = vsel %vm167_vm2, %v179_v22, 0.0 }
  0xd0   : > { %v182_v25 = vadd.f32 %v181_v24, %v180_v23 }
  0xd2   : > { %v183_v26 = vrot.slane %v182_v25, 4 }
  0xd4   : > { %v184_v27 = vadd.f32 %v183_v26, %v182_v25 }
  0xd6   : > { %v185_v28 = vrot.slane %v184_v27, 2 }
  0xd8   : > { %v186_v30 = vadd.f32 %v185_v28, %v184_v27 }
  0xda   : > { %v187_v31 = vrot.slane %v186_v30, 1 }
  0xdc   : > { %v188_v33 = vadd.f32 %v187_v31, %v186_v30 }
  0xde   : > { %v191_v34 = vsub.f32 %v188_v33, %v190_v32 }
  0xe0   : > { %v192_v35 = vsub.f32 0.0, %v191_v34 }
  0xe2   : > { %v193_v36 = vand.u32 2147483647, %v192_v35 }
  0xe4   : > { %v194_v37 = vmax.f32 %v193_v36, 1e-08 }
  0xe6   : > { %282 = vrsqrt.f32 %v194_v37  ;;  %vm197_vm3 = vcmp.eq.f32.partialorder %v194_v37, inf  ;;  %v200_v40 = vand.u32 2147483648, %v194_v37  ;;  %vm199_vm4 = vcmp.eq.f32.partialorder %v194_v37, 0.0 }
  0xf0   : > { %v283_v39 = vpop.eup %282 }
  0xf1   : > { %v196_v41 = vmul.f32 %v283_v39, %v194_v37 }
  0xf3   : > { %v198_v43 = vsel %vm197_vm3, %v194_v37, %v196_v41 }
  0xf4   : > { %v201_v44 = vsel %vm199_vm4, %v200_v40, %v198_v43 }
  0xf5   : > { %v205_v45 = vrot.slane %v201_v44, %v204_v42 }
  0xf7   : > { %284 = vrcp.f32 %v205_v45 }
 0x101   : > { %v285_v46 = vpop.eup %284 }
 0x102   : > { %v207_v47 = vmul.f32 %v285_v46, %v176_v19  ;;  %v208_v48 = vmul.f32 %v285_v46, %v177_v20 }
 0x104   : > { %209 = vst.msk [vmem:[%s376_s1] sm:$0xff] %vm167_vm2, %v207_v47  ;;  %210 = vst.msk [vmem:[%s376_s1 + $0x8] sm:$0xff] %vm167_vm2, %v208_v48 }
 0x105 PF: > { %p8_p10 = scmp.ge.s32.totalorder %s336_s10, 5   ;;  %s377_s6 = smov %s304_s7 }
 0x106   : > { %s378_s7 = smov %s343_s13  ;;  %s379_s8 = smov %s336_s10 }
 0x107   :  { %10 = sbr.rel (!%p8_p10) target bundleno = 2 (0x2), region = 101 }

// kernel: lorentz_batchnorm_train.4
= control target key start
LH: loop header
LB: loop body
LE: loop exit
PB: predicated region body
PF: predicated region fallthrough
CT: control target
= control target key end

     0   :  { %7 = vsyncpa [#allocation5], 0  ;;  %s516_s9 = smov 0   ;;  %s518_s10 = smov 0   ;;  %s592_s0 = inlined_call_operand.vmem [shape: f32[16,1], index: 0, kind: input, shape index: {}]   ;;  %s593_s1 = inlined_call_operand.vmem [shape: f32[16,384], index: 1, kind: input, shape index: {}]   ;;  %s594_s2 = inlined_call_operand.hbm [shape: f32[1,1], index: 2, kind: output, shape index: {}]  }
   0x1   :  { %s520_s11 = smov 0  }
   0x2 LB: > { %s529_s12 = sadd.s32 4294967295, %s495_s11   ;;  %s531_s13 = sadd.s32 1, %s495_s11   ;;  %s495_s11 = sphi %s520_s11, %s597_s11   ;;  %s491_s10 = sphi %s518_s10, %s596_s10   ;;  %s487_s9 = sphi %s516_s9, %s595_s9  }
   0x3   : > { %s38_s14 = ssub.s32 %s495_s11, %s531_s13  ;;  %s41_s15 = sadd.s32 1, %s491_s10 }
   0x4   : > { %p39_p0 = scmp.eq.s32.totalorder %s38_s14, 0  ;;  %p48_p1 = scmp.ne.s32.totalorder %s491_s10, %s487_s9 }
   0x5   : > { %p49_p2 = scmp.eq.s32.totalorder %s495_s11, 0  ;;  %p382_p4 = scmp.ge.s32.totalorder %s495_s11, 3 }
   0x6   : > { %s538_s16 = scalar_select %p39_p0, %s491_s10, %s41_s15  }
   0x7   : > { %p50_p3 = por %p49_p2, %p48_p1  ;;  %98 = sbr.rel (%p382_p4) target bundleno = 21 (0x15), region = 20 }
   0xe   : > { %101 = sbr.rel (!%p50_p3) target bundleno = 21 (0x15), region = 24  ;;  %s103_s17 = sand.u32 (%p50_p3), 1, %s491_s10  }
   0xf   : > { %s384_s18 = sshll.u32 (%p50_p3), %s495_s11, 3  ;;  %s383_s19 = sshll.u32 (%p50_p3), %s103_s17, 4 }
  0x10   : > { %s107_s22 = scalar_lea.vmem (%p50_p3), %s593_s1, %s384_s18  ;;  %s105_s23 = scalar_lea.vmem (%p50_p3), [#allocation3], %s383_s19 }
  0x11   : > { %v137_v0 = vld [vmem:[%s107_s22] sm:$0xff] (%p50_p3)  ;;  %v139_v1 = vld [vmem:[%s107_s22 + $0x18] sm:$0xff] (%p50_p3) }
  0x12   : > { %138 = vst [vmem:[%s105_s23] sm:$0xff] (%p50_p3), %v137_v0  ;;  %140 = vst [vmem:[%s105_s23 + $0x8] sm:$0xff] (%p50_p3), %v139_v1 }
  0x15 PF: > { %p385_p5 = scmp.ge.s32.totalorder %s495_s11, 1  ;;  %p145_p6 = scmp.lt.s32.totalorder %s495_s11, 4 }
  0x17   : > { %p146_p7 = pnand %p385_p5, %p145_p6 }
  0x18   : > { %s152_s24 = sand.u32 (!%p146_p7), 1, %s487_s9   ;;  %p387_p8 = scmp.ne.s32.totalorder (!%p146_p7), %s529_s12, 0 }
  0x19   : > { %149 = sbr.rel (%p146_p7) target bundleno = 471 (0x1d7), region = 62  ;;  %s545_s25 = sshll.u32 (!%p146_p7), %s152_s24, 4 }
  0x1a   : > { %s154_s26 = scalar_lea.vmem (!%p146_p7), [#allocation3], %s545_s25 }
  0x20   : > { %171 = sbr.rel (%p387_p8) target bundleno = 39 (0x27), region = 70  ;;  %vm172_vm0 = vcmask (!%p387_p8), 0   ;;  %v497_v2 = vmov (!%p387_p8), 0.0  }
  0x21   : > { %173 = vst.msk [vmem:[#allocation2] sm:$0x1] (!%p387_p8), %vm172_vm0, %v497_v2 }
  0x27 PF: > { %v176_v3 = vld [vmem:[%s592_s0] sm:$0xff]  ;;  %v178_v4 = vlaneseq  ;;  %v498_v5 = vmov 0   ;;  %v177_v9 = vld [vmem:[%s592_s0 + $0x8] sm:$0xff]  ;;  %v499_v10 = vmov 0.0   ;;  %s389_s3 = sshll.u32 %s529_s12, 7  ;;  %vm319_vm9 = vcmask 0  }
  0x28   : > { %429 = vset.pattern.permute.xlu0 %v498_v5  ;;  %v262_v6 = vadd.f32 1.0, %v176_v3  ;;  %430 = vset.pattern.permute.xlu1 %v498_v5  ;;  %v204_v7 = vmul.f32 2.0, %v176_v3  ;;  %v174_v15 = vld [vmem:[%s154_s26] sm:$0xff]  ;;  %v175_v16 = vld [vmem:[%s154_s26 + $0x8] sm:$0xff]  ;;  %p390_p9 = scmp.ne.s32.totalorder %s529_s12, 2 }
  0x29   : > { %187 = vperm.xlu0 %429, %v176_v3   ;;  %v179_v8 = vshrl.u32 %v178_v4, 7 }
  0x2a   : > { %431 = vrcp.f32 %v262_v6  ;;  %207 = vperm.xlu1 %430, %v204_v7  }
  0x2b   : > { %vm181_vm1 = vcmp.eq.s32.totalorder %v179_v8, 0  ;;  %v228_v28 = vsub.s32 0, %v179_v8 }
  0x2c   : > { %v183_v11 = vsel %vm181_vm1, 1.0, %v499_v10 }
  0x2d   : > { %192 = vperm.xlu0 %429, %v177_v9   ;;  %v272_v12 = vadd.f32 %v183_v11, %v176_v3 }
  0x31   : > { %280 = vperm.xlu0 %429, %v272_v12  }
  0x34   : > { %v432_v13 = vpop.eup %431 }
  0x35   : > { %268 = vperm.xlu1 %430, %v432_v13  }
  0x39   : > { %285 = vperm.xlu1 %430, %v177_v9  }
  0xa8   : > { %v188_v14 = vpop.permute.xlu0 %187 }
  0xa9   : > { %v195_v18 = vmul.f32 %v188_v14, %v174_v15  ;;  %v208_v25 = vpop.permute.xlu1 %207 }
  0xaa   : > { %v210_v27 = vmul.f32 %v208_v25, %v174_v15 }
  0xac   : > { %v193_v17 = vpop.permute.xlu0 %192 }
  0xad   : > { %v196_v19 = vmul.f32 %v193_v17, %v175_v16 }
  0xaf   : > { %v197_v20 = vadd.f32 %v196_v19, %v195_v18 }
  0xb0   : > { %v281_v11 = vpop.permute.xlu0 %280 }
  0xb1   : > { %v198_v21 = vrot.slane %v197_v20, 4 }
  0xb3   : > { %v199_v22 = vadd.f32 %v198_v21, %v197_v20 }
  0xb4   : > { %v269_v7 = vpop.permute.xlu1 %268 }
  0xb5   : > { %v200_v23 = vrot.slane %v199_v22, 2 }
  0xb7   : > { %v201_v24 = vadd.f32 %v200_v23, %v199_v22 }
  0xb8   : > { %v286_v12 = vpop.permute.xlu1 %285 }
  0xb9   : > { %v202_v26 = vrot.slane %v201_v24, 1 }
  0xbb   : > { %v203_v29 = vadd.f32 %v202_v26, %v201_v24 }
  0xbd   : > { %v211_v30 = vsub.f32 %v203_v29, %v210_v27  ;;  %v309_v27 = vand.u32 127, %v178_v4 }
  0xbf   : > { %v212_v31 = vsub.f32 0.0, %v211_v30  ;;  %v229_v32 = vrot.slane %v211_v30, %v228_v28 }
  0xc1   : > { %v213_v33 = vmax.f32 %v212_v31, 1.0000001  ;;  %v230_v34 = vmul.f32 %v229_v32, %v188_v14  ;;  %v231_v35 = vmul.f32 %v229_v32, %v193_v17 }
  0xc3   : > { %v214_v36 = vmul.f32 %v213_v33, %v213_v33  ;;  %v232_v37 = vadd.f32 %v230_v34, %v174_v15  ;;  %v233_v38 = vadd.f32 %v231_v35, %v175_v16 }
  0xc5   : > { %v234_v39 = vmul.f32 %v232_v37, %v232_v37  ;;  %v235_v40 = vmul.f32 %v233_v38, %v233_v38  ;;  %v388_v41 = vadd.f32 -1.0, %v214_v36  ;;  %v243_v47 = vmul.f32 2.0, %v232_v37  ;;  %v315_v36 = vld [vmem:[#allocation2] sm:$0x1] }
  0xc7   : > { %v236_v42 = vadd.f32 %v235_v40, %v234_v39  ;;  %433 = vrsqrt.f32 %v388_v41  ;;  %v244_v51 = vmul.f32 %v243_v47, %v232_v37  ;;  %vm218_vm2 = vcmp.eq.f32.partialorder %v388_v41, inf }
  0xc8   : > { %v221_v56 = vand.u32 2147483648, %v388_v41  ;;  %vm220_vm3 = vcmp.eq.f32.partialorder %v388_v41, 0.0 }
  0xc9   : > { %v237_v43 = vrot.slane %v236_v42, 4 }
  0xcb   : > { %v238_v44 = vadd.f32 %v237_v43, %v236_v42 }
  0xcd   : > { %v239_v45 = vrot.slane %v238_v44, 2 }
  0xcf   : > { %v240_v46 = vadd.f32 %v239_v45, %v238_v44 }
  0xd1   : > { %v241_v48 = vrot.slane %v240_v46, 1  ;;  %v434_v49 = vpop.eup %433 }
  0xd2   : > { %v217_v53 = vmul.f32 %v434_v49, %v388_v41 }
  0xd3   : > { %v242_v50 = vadd.f32 %v241_v48, %v240_v46 }
  0xd4   : > { %v219_v55 = vsel %vm218_vm2, %v388_v41, %v217_v53 }
  0xd5   : > { %v245_v52 = vsub.f32 %v242_v50, %v244_v51  ;;  %v222_v57 = vsel %vm220_vm3, %v221_v56, %v219_v55 }
  0xd6   : > { %v223_v58 = vadd.f32 %v222_v57, %v213_v33 }
  0xd7   : > { %v246_v54 = vmax.f32 %v245_v52, 1e-08 }
  0xd9   : > { %435 = vrsqrt.f32 %v246_v54  ;;  %vm249_vm4 = vcmp.eq.f32.partialorder %v246_v54, inf  ;;  %v252_v61 = vand.u32 2147483648, %v246_v54  ;;  %vm251_vm5 = vcmp.eq.f32.partialorder %v246_v54, 0.0 }
  0xda   : > { %437 = vlog2.f32 %v223_v58 }
  0xe3   : > { %v436_v59 = vpop.eup %435 }
  0xe4   : > { %v248_v60 = vmul.f32 %v436_v59, %v246_v54  ;;  %v438_v0 = vpop.eup %437 }
  0xe5   : > { %v225_v1 = vmul.f32 0.6931472, %v438_v0 }
  0xe6   : > { %v250_v62 = vsel %vm249_vm4, %v246_v54, %v248_v60 }
  0xe7   : > { %v253_v63 = vsel %vm251_vm5, %v252_v61, %v250_v62 }
  0xe8   : > { %439 = vrcp.f32 %v253_v63 }
  0xf2   : > { %v440_v2 = vpop.eup %439 }
  0xf3   : > { %v255_v3 = vmul.f32 %v440_v2, %v225_v1 }
  0xf5   : > { %v259_v5 = vrot.slane %v255_v3, %v228_v28 }
  0xf7   : > { %v260_v6 = vmul.f32 %v259_v5, %v232_v37  ;;  %v261_v13 = vmul.f32 %v259_v5, %v233_v38 }
  0xf9   : > { %v265_v8 = vmul.f32 -1.0, %v260_v6 }
  0xfb   : > { %v271_v9 = vmul.f32 %v269_v7, %v265_v8 }
  0xfd   : > { %v277_v10 = vrot.slane %v271_v9, %v228_v28  ;;  %v311_v28 = vstv %s389_s3 }
  0xfe   : > { %v312_v29 = vadd.s32 %v311_v28, %v309_v27 }
  0xff   : > { %v288_v14 = vmul.f32 %v281_v11, %v277_v10  ;;  %v289_v15 = vmul.f32 %v286_v12, %v277_v10 }
 0x100   : > { %vm313_vm7 = vcmp.lt.s32.totalorder %v312_v29, 300 }
 0x101   : > { %v290_v16 = vadd.f32 %v288_v14, %v260_v6  ;;  %v291_v17 = vadd.f32 %v289_v15, %v261_v13 }
 0x103   : > { %v292_v18 = vmul.f32 %v290_v16, %v290_v16  ;;  %v293_v19 = vmul.f32 %v291_v17, %v291_v17 }
 0x105   : > { %v294_v20 = vadd.f32 %v293_v19, %v292_v18 }
 0x107   : > { %v295_v21 = vrot.slane %v294_v20, 4 }
 0x109   : > { %v296_v22 = vadd.f32 %v295_v21, %v294_v20 }
 0x10b   : > { %v297_v23 = vrot.slane %v296_v22, 2 }
 0x10d   : > { %v298_v24 = vadd.f32 %v297_v23, %v296_v22 }
 0x10f   : > { %v299_v25 = vrot.slane %v298_v24, 1 }
 0x111   : > { %v300_v26 = vadd.f32 %v299_v25, %v298_v24 }
 0x113   : > { %441 = vrsqrt.f32 %v300_v26  ;;  %vm303_vm6 = vcmp.eq.f32.partialorder %v300_v26, inf  ;;  %v306_v32 = vand.u32 2147483648, %v300_v26  ;;  %vm305_vm8 = vcmp.eq.f32.partialorder %v300_v26, 0.0 }
 0x11d   : > { %v442_v30 = vpop.eup %441 }
 0x11e   : > { %v302_v31 = vmul.f32 %v442_v30, %v300_v26 }
 0x120   : > { %v304_v33 = vsel %vm303_vm6, %v300_v26, %v302_v31 }
 0x121   : > { %v307_v34 = vsel %vm305_vm8, %v306_v32, %v304_v33 }
 0x122   : > { %v314_v35 = vsel %vm313_vm7, %v307_v34, 0.0 }
 0x123   : > { %316 = vadd.xlane.f32.xlu0 %v314_v35 }
 0x1ad   : > { %324 = sbr.rel (%p390_p9) target bundleno = 446 (0x1be), region = 74 }
 0x1b0   : > { %v317_v37 = vpop.xlane.xlu0 %316 }
 0x1b1   : > { %v318_v38 = vadd.f32 %v317_v37, %v315_v36 }
 0x1b3   : > { %320 = vst.msk [vmem:[#allocation2] sm:$0x1] %vm319_vm9, %v318_v38 }
 0x1ba   : > { %v325_v4 = vld [vmem:[#allocation2] sm:$0x1] }
 0x1bb   : > { %v326_v39 = vmul.f32 0.0033333334, %v325_v4 }
 0x1bd   : > { %327 = vst.msk [vmem:[#allocation4] sm:$0x1] %vm319_vm9, %v326_v39 }
 0x1be PF: > { %p399_p10 = scmp.eq.s32.totalorder %s529_s12, 2  ;;  %s500_s4 = smov [#allocation4]  }
 0x1bf   : > { %s335_s5 = sshll.u32 %s500_s4, 4  ;;  %s336_s5 = int_to_ptr.vmem [resolvable:$true] %s335_s5 }
 0x1c0   : > { %s443_s6 = scalar_lea.vmem %s336_s5, 16  ;;  %s449_s7 = scalar_lea.vmem %s336_s5, 32 }
 0x1c1   : > { %p444_p11 = scmp.ne.s32.totalorder %s336_s5, %s443_s6  ;;  %p450_p0 = scmp.lt.s32.totalorder %s336_s5, %s336_s5 }
 0x1c2   : > { %p451_p1 = scmp.lt.s32.totalorder %s449_s7, %s443_s6 }
 0x1c3   : > { %p445_p12 = pnand %p444_p11, %p399_p10 }
 0x1c4   : > { %p452_p2 = por %p451_p1, %p450_p0 }
 0x1c5   : > { %p446_p13 = pneg %p445_p12 }
 0x1c7   : > { %p453_p3 = pnand %p452_p2, %p446_p13 }
 0x1c9   : > { %456 = shalt.err (!%p453_p3)
}
 0x1ca   : > { %s457_s11 = scalar_lea.hbm %s594_s2, 16 }
 0x1cb   : > { %p458_p4 = scmp.ne.s32.totalorder %s594_s2, %s457_s11  ;;  %p463_p7 = scmp.lt.u32.totalorder %s457_s11, %s594_s2 }
 0x1cd   : > { %p459_p5 = pnand %p458_p4, %p399_p10 }
 0x1cf   : > { %p460_p6 = pneg %p459_p5 }
 0x1d1   : > { %p465_p8 = pnand %p463_p7, %p460_p6 }
 0x1d3   : > { %468 = shalt.err (!%p465_p8)
}
 0x1d4   : > { %396 = dma.vmem_to_hbm [thread:$0]  (%p399_p10), %s336_s5, 16, %s594_s2, [#allocation5]  }
 0x1d5   : > { %482 = dma.done.wait (%p399_p10), [#allocation5], 16  }
 0x1d6   : > { %484 = vsyncadd (%p399_p10), [#allocation5], 4294967280 }
 0x1d7 PF: > { %p10_p9 = scmp.ge.s32.totalorder %s531_s13, 5   ;;  %s595_s9 = smov %s491_s10 }
 0x1d8   : > { %s596_s10 = smov %s538_s16  ;;  %s597_s11 = smov %s531_s13 }
 0x1d9   :  { %12 = sbr.rel (!%p10_p9) target bundleno = 2 (0x2), region = 106 }
 0x1e0   :  { %348 = vsyncpa [#allocation5], 1 }
 0x1e1   :  { %350 = vsyncpa [#allocation5 + $0x1], 1 }

// kernel: lorentz_batchnorm_train.5
= control target key start
LH: loop header
LB: loop body
LE: loop exit
PB: predicated region body
PF: predicated region fallthrough
CT: control target
= control target key end

     0   :  { %s811_s0 = inlined_call_operand.vmem [shape: f32[16,1], index: 0, kind: input, shape index: {}]   ;;  %s812_s1 = inlined_call_operand.<no memory space> [shape: f32[1,1], index: 1, kind: input, shape index: {}]   ;;  %s813_s2 = inlined_call_operand.vmem [shape: f32[16,1], index: 2, kind: input, shape index: {}]   ;;  %s814_s4 = inlined_call_operand.vmem [shape: f32[16,384], index: 4, kind: input, shape index: {}]   ;;  %s815_s5 = inlined_call_operand.vmem [shape: f32[16,384], index: 5, kind: output, shape index: {}]   ;;  %s816_s3 = inlined_call_operand.<no memory space> [shape: f32[1,1], index: 3, kind: input, shape index: {}]  }
   0x1   :  { %v10_v0 = vstv %s812_s1  ;;  %v12_v1 = vstv %s816_s3 }
   0x2   :  { %11 = vst [vmem:[#allocation2] sm:$0x1] %v10_v0  ;;  %13 = vst [vmem:[#allocation3] sm:$0x1] %v12_v1 }
   0x3   :  { %s726_s22 = smov 0   ;;  %s728_s23 = smov 0  }
   0x4   :  { %s730_s24 = smov 0  }
   0x5 LB: > { %s600_s1 = sadd.s32 4294967295, %s686_s24   ;;  %s743_s3 = sadd.s32 1, %s686_s24   ;;  %s686_s24 = sphi %s730_s24, %s820_s24   ;;  %s682_s23 = sphi %s728_s23, %s819_s23   ;;  %s678_s22 = sphi %s726_s22, %s818_s22  }
   0x6   : > { %s107_s25 = ssub.s32 %s686_s24, %s743_s3  ;;  %s110_s26 = sadd.s32 1, %s682_s23 }
   0x7   : > { %p108_p0 = scmp.eq.s32.totalorder %s107_s25, 0  ;;  %p117_p1 = scmp.ne.s32.totalorder %s682_s23, %s678_s22 }
   0x8   : > { %p118_p2 = scmp.eq.s32.totalorder %s686_s24, 0  ;;  %p147_p3 = scmp.eq.s32.totalorder %s600_s1, 2 }
   0x9   : > { %s754_s27 = scalar_select %p108_p0, %s682_s23, %s110_s26  }
   0xa   : > { %p119_p4 = por %p118_p2, %p117_p1  ;;  %p756_p5 = por %p147_p3, %p117_p1 }
   0xb   : > { %p603_p6 = scmp.ge.s32.totalorder %s686_s24, 3 }
   0xd   : > { %181 = sbr.rel (%p603_p6) target bundleno = 27 (0x1b), region = 32 }
  0x14   : > { %184 = sbr.rel (!%p119_p4) target bundleno = 27 (0x1b), region = 36  ;;  %s186_s29 = sand.u32 (%p119_p4), 1, %s682_s23  }
  0x15   : > { %s605_s30 = sshll.u32 (%p119_p4), %s686_s24, 3  ;;  %s604_s6 = sshll.u32 (%p119_p4), %s186_s29, 4 }
  0x16   : > { %s190_s9 = scalar_lea.vmem (%p119_p4), %s814_s4, %s605_s30  ;;  %s188_s10 = scalar_lea.vmem (%p119_p4), [#allocation4], %s604_s6 }
  0x17   : > { %v220_v2 = vld [vmem:[%s190_s9] sm:$0xff] (%p119_p4)  ;;  %v222_v3 = vld [vmem:[%s190_s9 + $0x18] sm:$0xff] (%p119_p4) }
  0x18   : > { %221 = vst [vmem:[%s188_s10] sm:$0xff] (%p119_p4), %v220_v2  ;;  %223 = vst [vmem:[%s188_s10 + $0x8] sm:$0xff] (%p119_p4), %v222_v3 }
  0x1b PF: > { %p606_p7 = scmp.ge.s32.totalorder %s686_s24, 1  ;;  %p228_p8 = scmp.lt.s32.totalorder %s686_s24, 4 }
  0x1d   : > { %p229_p9 = pnand %p606_p7, %p228_p8 }
  0x1e   : > { %v263_v4 = vld [vmem:[%s811_s0] sm:$0xff] (!%p229_p9)  ;;  %v269_v5 = vlaneseq (!%p229_p9)  ;;  %v688_v6 = vmov (!%p229_p9), 0   ;;  %v264_v12 = vld [vmem:[%s811_s0 + $0x8] sm:$0xff] (!%p229_p9)  ;;  %v689_v13 = vmov (!%p229_p9), 0.0   ;;  %s235_s19 = sand.u32 (!%p229_p9), 1, %s678_s22  }
  0x1f   : > { %232 = sbr.rel (%p229_p9) target bundleno = 358 (0x166), region = 74  ;;  %640 = vset.pattern.permute.xlu0 (!%p229_p9), %v688_v6  ;;  %v353_v7 = vadd.f32 (!%p229_p9), 1.0, %v263_v4  ;;  %641 = vset.pattern.permute.xlu1 (!%p229_p9), %v688_v6  ;;  %v295_v8 = vmul.f32 (!%p229_p9), 2.0, %v263_v4  ;;  %v268_v9 = vld [vmem:[#allocation2] sm:$0x1] (!%p229_p9)  ;;  %v266_v24 = vld [vmem:[%s813_s2 + $0x8] sm:$0xff] (!%p229_p9) }
  0x20   : > { %278 = vperm.xlu0 (!%p229_p9), %640, %v263_v4   ;;  %v270_v10 = vshrl.u32 (!%p229_p9), %v269_v5, 7  ;;  %v383_v11 = vadd.f32 (!%p229_p9), 1e-05, %v268_v9  ;;  %v265_v16 = vld [vmem:[%s813_s2] sm:$0xff] (!%p229_p9)  ;;  %s784_s20 = sshll.u32 (!%p229_p9), %s235_s19, 4 }
  0x21   : > { %642 = vrcp.f32 (!%p229_p9), %v353_v7  ;;  %298 = vperm.xlu1 (!%p229_p9), %641, %v295_v8   ;;  %v398_v17 = vadd.f32 (!%p229_p9), 1.0, %v265_v16  ;;  %v267_v18 = vld [vmem:[#allocation3] sm:$0x1] (!%p229_p9)  ;;  %v420_v25 = vmul.f32 (!%p229_p9), 2.0, %v265_v16  ;;  %s237_s21 = scalar_lea.vmem (!%p229_p9), [#allocation4], %s784_s20  ;;  %s260_s22 = scalar_lea.vmem (!%p229_p9), [#allocation5], %s784_s20 }
  0x22   : > { %vm272_vm0 = vcmp.eq.s32.totalorder (!%p229_p9), %v270_v10, 0  ;;  %644 = vrcp.f32 (!%p229_p9), %v383_v11  ;;  %v777_v20 = vsub.s32 (!%p229_p9), 0, %v270_v10  ;;  %v261_v29 = vld [vmem:[%s237_s21] sm:$0xff] (!%p229_p9)  ;;  %v262_v30 = vld [vmem:[%s237_s21 + $0x8] sm:$0xff] (!%p229_p9) }
  0x23   : > { %v274_v14 = vsel (!%p229_p9), %vm272_vm0, 1.0, %v689_v13  ;;  %646 = vrcp.f32 (!%p229_p9), %v398_v17 }
  0x24   : > { %283 = vperm.xlu0 (!%p229_p9), %640, %v264_v12   ;;  %v363_v15 = vadd.f32 (!%p229_p9), %v274_v14, %v263_v4  ;;  %v434_v27 = vadd.f32 (!%p229_p9), %v274_v14, %v265_v16 }
  0x26   : > { %s611_s25 = sshll.u32 (%p756_p5), %s600_s1, 3 }
  0x27   : > { %s507_s30 = scalar_lea.vmem (%p756_p5), %s815_s5, %s611_s25 }
  0x28   : > { %371 = vperm.xlu0 %640, %v363_v15  }
  0x2b   : > { %v643_v19 = vpop.eup %642 }
  0x2c   : > { %v645_v21 = vpop.eup %644  ;;  %359 = vperm.xlu1 %641, %v643_v19  }
  0x2d   : > { %v386_v22 = vmul.f32 %v645_v21, %v267_v18  ;;  %v647_v26 = vpop.eup %646 }
  0x2f   : > { %v391_v23 = vrot.slane %v386_v22, %v777_v20 }
  0x30   : > { %376 = vperm.xlu1 %641, %v264_v12  }
  0x31   : > { %393 = vperm.xlu0 %640, %v391_v23  }
  0x34   : > { %403 = vperm.xlu1 %641, %v265_v16  }
  0x35   : > { %408 = vperm.xlu0 %640, %v266_v24  }
  0x38   : > { %423 = vperm.xlu1 %641, %v420_v25  }
  0x39   : > { %430 = vperm.xlu0 %640, %v647_v26  }
  0x3c   : > { %442 = vperm.xlu1 %641, %v434_v27  }
  0x3d   : > { %447 = vperm.xlu0 %640, %v266_v24  }
  0x9f   : > { %v279_v28 = vpop.permute.xlu0 %278 }
  0xa0   : > { %v286_v32 = vmul.f32 %v279_v28, %v261_v29  ;;  %v299_v39 = vpop.permute.xlu1 %298 }
  0xa1   : > { %v301_v41 = vmul.f32 %v299_v39, %v261_v29 }
  0xa3   : > { %v284_v31 = vpop.permute.xlu0 %283 }
  0xa4   : > { %v287_v33 = vmul.f32 %v284_v31, %v262_v30 }
  0xa6   : > { %v288_v34 = vadd.f32 %v287_v33, %v286_v32 }
  0xa7   : > { %v372_v22 = vpop.permute.xlu0 %371 }
  0xa8   : > { %v289_v35 = vrot.slane %v288_v34, 4 }
  0xaa   : > { %v290_v36 = vadd.f32 %v289_v35, %v288_v34 }
  0xab   : > { %v360_v19 = vpop.permute.xlu1 %359 }
  0xac   : > { %v291_v37 = vrot.slane %v290_v36, 2 }
  0xae   : > { %v292_v38 = vadd.f32 %v291_v37, %v290_v36 }
  0xaf   : > { %v377_v26 = vpop.permute.xlu1 %376 }
  0xb0   : > { %v293_v40 = vrot.slane %v292_v38, 1  ;;  %v394_v25 = vpop.permute.xlu0 %393 }
  0xb2   : > { %v294_v42 = vadd.f32 %v293_v40, %v292_v38 }
  0xb3   : > { %v404_v35 = vpop.permute.xlu1 %403 }
  0xb4   : > { %v302_v43 = vsub.f32 %v294_v42, %v301_v41  ;;  %v409_v34 = vpop.permute.xlu0 %408 }
  0xb6   : > { %v303_v44 = vsub.f32 0.0, %v302_v43  ;;  %v320_v45 = vrot.slane %v302_v43, %v777_v20 }
  0xb8   : > { %v304_v46 = vmax.f32 %v303_v44, 1.0000001  ;;  %v321_v47 = vmul.f32 %v320_v45, %v279_v28  ;;  %v322_v48 = vmul.f32 %v320_v45, %v284_v31  ;;  %v424_v44 = vpop.permute.xlu1 %423 }
  0xba   : > { %v305_v49 = vmul.f32 %v304_v46, %v304_v46  ;;  %v323_v50 = vadd.f32 %v321_v47, %v261_v29  ;;  %v324_v51 = vadd.f32 %v322_v48, %v262_v30  ;;  %v431_v47 = vpop.permute.xlu0 %430 }
  0xbc   : > { %v325_v52 = vmul.f32 %v323_v50, %v323_v50  ;;  %v326_v53 = vmul.f32 %v324_v51, %v324_v51  ;;  %v609_v54 = vadd.f32 -1.0, %v305_v49  ;;  %v334_v60 = vmul.f32 2.0, %v323_v50 }
  0xbe   : > { %v327_v55 = vadd.f32 %v326_v53, %v325_v52  ;;  %648 = vrsqrt.f32 %v609_v54  ;;  %v335_v0 = vmul.f32 %v334_v60, %v323_v50  ;;  %vm309_vm1 = vcmp.eq.f32.partialorder %v609_v54, inf  ;;  %v443_v52 = vpop.permute.xlu1 %442 }
  0xbf   : > { %v312_v5 = vand.u32 2147483648, %v609_v54  ;;  %vm311_vm2 = vcmp.eq.f32.partialorder %v609_v54, 0.0 }
  0xc0   : > { %v328_v56 = vrot.slane %v327_v55, 4 }
  0xc2   : > { %v329_v57 = vadd.f32 %v328_v56, %v327_v55 }
  0xc4   : > { %v330_v58 = vrot.slane %v329_v57, 2 }
  0xc6   : > { %v331_v59 = vadd.f32 %v330_v58, %v329_v57 }
  0xc8   : > { %v332_v61 = vrot.slane %v331_v59, 1  ;;  %v649_v62 = vpop.eup %648 }
  0xc9   : > { %v308_v2 = vmul.f32 %v649_v62, %v609_v54 }
  0xca   : > { %v333_v63 = vadd.f32 %v332_v61, %v331_v59 }
  0xcb   : > { %v310_v4 = vsel %vm309_vm1, %v609_v54, %v308_v2 }
  0xcc   : > { %v336_v1 = vsub.f32 %v333_v63, %v335_v0  ;;  %v313_v6 = vsel %vm311_vm2, %v312_v5, %v310_v4 }
  0xcd   : > { %v314_v7 = vadd.f32 %v313_v6, %v304_v46 }
  0xce   : > { %v337_v3 = vmax.f32 %v336_v1, 1e-08 }
  0xd0   : > { %650 = vrsqrt.f32 %v337_v3  ;;  %vm340_vm3 = vcmp.eq.f32.partialorder %v337_v3, inf  ;;  %v343_v10 = vand.u32 2147483648, %v337_v3  ;;  %vm342_vm4 = vcmp.eq.f32.partialorder %v337_v3, 0.0 }
  0xd1   : > { %652 = vlog2.f32 %v314_v7 }
  0xda   : > { %v651_v8 = vpop.eup %650 }
  0xdb   : > { %v339_v9 = vmul.f32 %v651_v8, %v337_v3  ;;  %v653_v13 = vpop.eup %652 }
  0xdc   : > { %v316_v14 = vmul.f32 0.6931472, %v653_v13 }
  0xdd   : > { %v341_v11 = vsel %vm340_vm3, %v337_v3, %v339_v9 }
  0xde   : > { %v344_v12 = vsel %vm342_vm4, %v343_v10, %v341_v11 }
  0xdf   : > { %654 = vrcp.f32 %v344_v12 }
  0xe9   : > { %v655_v15 = vpop.eup %654 }
  0xea   : > { %v346_v16 = vmul.f32 %v655_v15, %v316_v14 }
  0xec   : > { %v350_v17 = vrot.slane %v346_v16, %v777_v20 }
  0xee   : > { %v351_v18 = vmul.f32 %v350_v17, %v323_v50  ;;  %v352_v28 = vmul.f32 %v350_v17, %v324_v51  ;;  %v448_v51 = vpop.permute.xlu0 %447 }
  0xf0   : > { %v356_v21 = vmul.f32 -1.0, %v351_v18 }
  0xf2   : > { %v362_v23 = vmul.f32 %v360_v19, %v356_v21 }
  0xf4   : > { %v368_v24 = vrot.slane %v362_v23, %v777_v20 }
  0xf6   : > { %v379_v27 = vmul.f32 %v372_v22, %v368_v24  ;;  %v380_v29 = vmul.f32 %v377_v26, %v368_v24 }
  0xf8   : > { %v381_v30 = vadd.f32 %v379_v27, %v351_v18  ;;  %v382_v31 = vadd.f32 %v380_v29, %v352_v28 }
  0xfa   : > { %v396_v32 = vmul.f32 %v394_v25, %v381_v30  ;;  %v397_v33 = vmul.f32 %v394_v25, %v382_v31 }
  0xfc   : > { %v412_v36 = vmul.f32 %v409_v34, %v397_v33  ;;  %v411_v37 = vmul.f32 %v404_v35, %v396_v32  ;;  %v426_v46 = vmul.f32 %v424_v44, %v396_v32 }
  0xfe   : > { %v413_v38 = vadd.f32 %v412_v36, %v411_v37 }
 0x100   : > { %v414_v39 = vrot.slane %v413_v38, 4 }
 0x102   : > { %v415_v40 = vadd.f32 %v414_v39, %v413_v38 }
 0x104   : > { %v416_v41 = vrot.slane %v415_v40, 2 }
 0x106   : > { %v417_v42 = vadd.f32 %v416_v41, %v415_v40 }
 0x108   : > { %v418_v43 = vrot.slane %v417_v42, 1 }
 0x10a   : > { %v419_v45 = vadd.f32 %v418_v43, %v417_v42 }
 0x10c   : > { %v427_v48 = vsub.f32 %v419_v45, %v426_v46 }
 0x10e   : > { %v433_v49 = vmul.f32 %v431_v47, %v427_v48 }
 0x110   : > { %v439_v50 = vrot.slane %v433_v49, %v777_v20 }
 0x112   : > { %v451_v53 = vmul.f32 %v448_v51, %v439_v50  ;;  %v450_v54 = vmul.f32 %v443_v52, %v439_v50 }
 0x114   : > { %v453_v55 = vadd.f32 %v451_v53, %v397_v33  ;;  %v452_v56 = vadd.f32 %v450_v54, %v396_v32 }
 0x116   : > { %v455_v57 = vmul.f32 %v453_v55, %v453_v55  ;;  %v454_v58 = vmul.f32 %v452_v56, %v452_v56  ;;  %v463_v0 = vmul.f32 2.0, %v452_v56 }
 0x118   : > { %v456_v59 = vadd.f32 %v455_v57, %v454_v58  ;;  %v464_v3 = vmul.f32 %v463_v0, %v452_v56 }
 0x11a   : > { %v457_v60 = vrot.slane %v456_v59, 4 }
 0x11c   : > { %v458_v61 = vadd.f32 %v457_v60, %v456_v59 }
 0x11e   : > { %v459_v62 = vrot.slane %v458_v61, 2 }
 0x120   : > { %v460_v63 = vadd.f32 %v459_v62, %v458_v61 }
 0x122   : > { %v461_v1 = vrot.slane %v460_v63, 1 }
 0x124   : > { %v462_v2 = vadd.f32 %v461_v1, %v460_v63 }
 0x126   : > { %v465_v4 = vsub.f32 %v462_v2, %v464_v3 }
 0x128   : > { %v466_v5 = vmax.f32 %v465_v4, 1e-08 }
 0x12a   : > { %656 = vrsqrt.f32 %v466_v5  ;;  %vm469_vm5 = vcmp.eq.f32.partialorder %v466_v5, inf  ;;  %v472_v8 = vand.u32 2147483648, %v466_v5  ;;  %vm471_vm6 = vcmp.eq.f32.partialorder %v466_v5, 0.0 }
 0x134   : > { %v657_v6 = vpop.eup %656 }
 0x135   : > { %v468_v7 = vmul.f32 %v657_v6, %v466_v5 }
 0x137   : > { %v470_v9 = vsel %vm469_vm5, %v466_v5, %v468_v7 }
 0x138   : > { %v473_v10 = vsel %vm471_vm6, %v472_v8, %v470_v9 }
 0x139   : > { %v474_v11 = vmul.f32 1.442695, %v473_v10 }
 0x13b   : > { %658 = vpow2.f32 %v474_v11 }
 0x145   : > { %v659_v12 = vpop.eup %658 }
 0x146   : > { %660 = vrcp.f32 %v659_v12 }
 0x147   : > { %662 = vrcp.f32 %v473_v10 }
 0x150   : > { %v661_v13 = vpop.eup %660 }
 0x151   : > { %v477_v14 = vadd.f32 %v661_v13, %v659_v12  ;;  %v479_v15 = vsub.f32 %v659_v12, %v661_v13  ;;  %v663_v18 = vpop.eup %662 }
 0x153   : > { %v478_v16 = vmul.f32 0.5, %v477_v14  ;;  %v480_v17 = vmul.f32 0.5, %v479_v15 }
 0x155   : > { %v482_v19 = vmul.f32 %v663_v18, %v480_v17  ;;  %v486_v21 = vrot.slane %v478_v16, %v777_v20 }
 0x157   : > { %v492_v22 = vrot.slane %v482_v19, %v777_v20  ;;  %v487_v23 = vmul.f32 %v486_v21, %v404_v35  ;;  %v488_v24 = vmul.f32 %v486_v21, %v409_v34  ;;  %505 = sbr.rel (!%p756_p5) target bundleno = 358 (0x166), region = 82 }
 0x159   : > { %v493_v25 = vmul.f32 %v492_v22, %v452_v56  ;;  %v494_v26 = vmul.f32 %v492_v22, %v453_v55 }
 0x15b   : > { %v495_v27 = vadd.f32 %v493_v25, %v487_v23  ;;  %v496_v28 = vadd.f32 %v494_v26, %v488_v24 }
 0x15d   : > { %497 = vst [vmem:[%s260_s22] sm:$0xff] %v495_v27  ;;  %498 = vst [vmem:[%s260_s22 + $0x8] sm:$0xff] %v496_v28 }
 0x164   : > { %v537_v29 = vld [vmem:[%s260_s22] sm:$0xff]  ;;  %v539_v30 = vld [vmem:[%s260_s22 + $0x8] sm:$0xff] }
 0x165   : > { %538 = vst [vmem:[%s507_s30] sm:$0xff] %v537_v29  ;;  %540 = vst [vmem:[%s507_s30 + $0x18] sm:$0xff] %v539_v30 }
 0x166 PF: > { %p16_p10 = scmp.ge.s32.totalorder %s743_s3, 5   ;;  %s818_s22 = smov %s682_s23 }
 0x167   : > { %s819_s23 = smov %s754_s27  ;;  %s820_s24 = smov %s743_s3 }
 0x168   :  { %18 = sbr.rel (!%p16_p10) target bundleno = 5 (0x5), region = 151 }

</bundles_post_ra>
